<compile_context>
chip_gen: v7x
topology: tpu7x:2x2x1
jax: 0.10.0
libtpu: 0.0.40
codegen_flags: <defaults>
</compile_context>

<pallas_src>
import functools

import jax
import jax.numpy as jnp
import numpy as np
from jax import lax
from jax.experimental import pallas as pl
from jax.experimental.pallas import tpu as pltpu

COMPUTE_DTYPE = jnp.bfloat16          # MXU inputs / streamed activations
_ITEMSIZE = np.dtype(COMPUTE_DTYPE).itemsize
MAX_SINGLE_BLOCK_T = 1024             # below this, one full-time block
TILE_T = 512                          # lane tile (multiple of 128) for big T
VMEM_LIMIT_BYTES = 32 * 1024 * 1024   # explicit scoped-VMEM budget (v7x-safe)


# ----------------------------------------------------------------------------
# small helpers
# ----------------------------------------------------------------------------
def _time_tiling(t_out):
    """Return (tile_t, t_blocks, t_out_padded)."""
    if t_out <= MAX_SINGLE_BLOCK_T:
        return t_out, 1, t_out
    n = pl.cdiv(t_out, TILE_T)
    return TILE_T, n, n * TILE_T


def _fit_length(x, length):
    """Pad (with zeros) or trim the time axis of (N, C, T) to `length`."""
    cur = x.shape[-1]
    if cur < length:
        return jnp.pad(x, ((0, 0), (0, 0), (0, length - cur)))
    if cur > length:
        return x[:, :, :length]
    return x


def _prep_stage1_inputs(x, stride, t_out_pad):
    """Pad + phase-split + 1-column halo pre-pad the stage-1 conv input.

    Returns (phases, taps, max_offs) with taps[k] = (phase_idx, offset) such
    that the stage-1 conv output at halo position p = t0 - 1 + j reads
    phases[phase_idx][:, :, t0 + j + offset]  (K = 3, padding = 1).
    """
    padding = 1
    xp = jnp.pad(x, ((0, 0), (0, 0), (padding, padding)))
    if stride == 1:
        phase_list = [xp]
        taps = ((0, 0), (0, 1), (0, 2))
    elif stride == 2:
        phase_list = [xp[:, :, 0::2], xp[:, :, 1::2]]
        taps = ((0, 0), (1, 0), (0, 1))
    else:
        raise NotImplementedError("stride must be 1 or 2")

    max_offs = [0] * len(phase_list)
    for pi, off in taps:
        max_offs[pi] = max(max_offs[pi], off)

    phases = []
    for ph, mo in zip(phase_list, max_offs):
        ph = jnp.pad(ph, ((0, 0), (0, 0), (1, 0)))          # halo pre-pad
        phases.append(_fit_length(ph, t_out_pad + 2 + mo))
    return phases, taps, tuple(max_offs)


# ----------------------------------------------------------------------------
# Fused block kernel
#   stage 1: conv3 (stride 1/2 folded into phases) + bias [+ LeakyReLU]
#            [+ skip residual], computed over a tile_t+2 halo window
#   stage 2: None | ResBlock (conv3+ReLU+conv1x1 + skip) | plain conv3
# ----------------------------------------------------------------------------
def _fused_kernel(*refs, n_phase, taps, max_offs, tile_t, t_blocks, t_out,
                  act, add_res, stage2):
    idx = 0
    x_refs = refs[idx:idx + n_phase]; idx += n_phase
    w1_ref = refs[idx]; idx += 1                 # (3, Cmid, Cin)  bf16, resident
    b1_ref = refs[idx]; idx += 1                 # (Cmid, 1)       f32,  resident
    res_ref = None
    if add_res:
        res_ref = refs[idx]; idx += 1            # (1, Cmid, Tpad+2) resident
    if stage2 == "res":
        wr1_ref, br1_ref, wr2_ref, br2_ref = refs[idx:idx + 4]; idx += 4
    elif stage2 == "conv":
        w2_ref, b2_ref = refs[idx:idx + 2]; idx += 2
    o_ref = refs[-1]                             # (1, Cout, tile_t)

    cmid = w1_ref.shape[1]
    cout = o_ref.shape[1]
    ext = tile_t + 2                             # halo width for stage 2

    if t_blocks == 1:
        t0 = 0
        wins = [x_refs[pi][0] for pi in range(n_phase)]
        res_win = res_ref[0] if add_res else None
    else:
        t0 = pl.multiple_of(pl.program_id(1) * tile_t, tile_t)
        wins = [x_refs[pi][0, :, pl.ds(t0, ext + max_offs[pi])]
                for pi in range(n_phase)]
        res_win = res_ref[0, :, pl.ds(t0, ext)] if add_res else None

    # ---- stage 1: K small static MXU dots against the resident window -------
    h = jnp.broadcast_to(b1_ref[...], (cmid, ext)).astype(jnp.float32)
    for k, (pi, off) in enumerate(taps):
        h = h + jnp.dot(w1_ref[k], wins[pi][:, off:off + ext],
                        preferred_element_type=jnp.float32)
    if act == "leaky":
        h = jnp.where(h >= 0.0, h, 0.2 * h)
    elif act == "relu":
        h = jnp.maximum(h, 0.0)
    if add_res:
        h = h + res_win.astype(jnp.float32)

    if stage2 is None:
        o_ref[0] = h[:, 1:1 + tile_t].astype(o_ref.dtype)
        return

    # Zero halo / out-of-range columns == zero padding of the stage-2 conv.
    pos = t0 - 1 + lax.broadcasted_iota(jnp.int32, (cmid, ext), 1)
    h = jnp.where((pos >= 0) & (pos < t_out), h, 0.0)
    h_lo = h.astype(COMPUTE_DTYPE)

    if stage2 == "res":
        r = jnp.broadcast_to(br1_ref[...], (cout, tile_t)).astype(jnp.float32)
        for k in range(3):
            r = r + jnp.dot(wr1_ref[k], h_lo[:, k:k + tile_t],
                            preferred_element_type=jnp.float32)
        r = jnp.maximum(r, 0.0).astype(COMPUTE_DTYPE)
        y = jnp.dot(wr2_ref[0], r, preferred_element_type=jnp.float32)
        y = y + br2_ref[...] + h[:, 1:1 + tile_t]          # resblock skip (f32)
    else:  # "conv": fused out-layer conv3 (pad=1)
        y = jnp.broadcast_to(b2_ref[...], (cout, tile_t)).astype(jnp.float32)
        for k in range(3):
            y = y + jnp.dot(w2_ref[k], h_lo[:, k:k + tile_t],
                            preferred_element_type=jnp.float32)

    o_ref[0] = y.astype(o_ref.dtype)


# ----------------------------------------------------------------------------
# Wrapper (grid / BlockSpecs)
# ----------------------------------------------------------------------------
def fused_block_pallas(x, w1, b1, *, stride=1, act=None, residual=None,
                       stage2=None, stage2_params=None):
    """Conv1d(K=3, pad=1) + bias [+ act] [+ residual] [+ ResBlock | + conv3].

    x:         (N, Cin, T)      COMPUTE_DTYPE, NCT
    w1:        (3, Cmid, Cin)   COMPUTE_DTYPE (k-major, pre-transposed)
    b1:        (Cmid, 1)        float32
    residual:  optional (N, Cmid, T_out), added AFTER the activation
    stage2:    None | "res" (ResBlock params dict) | "conv" ((w2, b2) conv3)
    returns    (N, Cout, T_out) COMPUTE_DTYPE
    """
    N, cin, T = x.shape
    K, cmid, _ = w1.shape
    t_out = (T + 2 - K) // stride + 1
    tile_t, t_blocks, t_out_pad = _time_tiling(t_out)

    phases, taps, max_offs = _prep_stage1_inputs(x, stride, t_out_pad)

    inputs = list(phases) + [w1, b1]
    in_specs = [pl.BlockSpec((1, cin, int(ph.shape[2])), lambda n, t: (n, 0, 0))
                for ph in phases]                           # resident per sample
    in_specs += [pl.BlockSpec((K, cmid, cin), lambda n, t: (0, 0, 0)),
                 pl.BlockSpec((cmid, 1), lambda n, t: (0, 0))]

    add_res = residual is not None
    if add_res:
        res = _fit_length(jnp.pad(residual, ((0, 0), (0, 0), (1, 0))),
                          t_out_pad + 2)
        inputs.append(res)
        in_specs.append(pl.BlockSpec((1, cmid, int(res.shape[2])),
                                     lambda n, t: (n, 0, 0)))

    cout = cmid
    flops = 2 * N * t_out * K * cin * cmid
    if stage2 == "res":
        p = stage2_params
        inputs += [p["w1"], p["b1"], p["w2"], p["b2"]]
        in_specs += [pl.BlockSpec((3, cmid, cmid), lambda n, t: (0, 0, 0)),
                     pl.BlockSpec((cmid, 1), lambda n, t: (0, 0)),
                     pl.BlockSpec((1, cmid, cmid), lambda n, t: (0, 0, 0)),
                     pl.BlockSpec((cmid, 1), lambda n, t: (0, 0))]
        flops += 2 * N * t_out * cmid * cmid * 4
    elif stage2 == "conv":
        w2, b2 = stage2_params
        cout = int(w2.shape[1])
        inputs += [w2, b2]
        in_specs += [pl.BlockSpec((3, cout, cmid), lambda n, t: (0, 0, 0)),
                     pl.BlockSpec((cout, 1), lambda n, t: (0, 0))]
        flops += 2 * N * t_out * 3 * cmid * cout

    bytes_accessed = int(sum(int(a.size) * a.dtype.itemsize for a in inputs)
                         + N * cout * t_out_pad * _ITEMSIZE)
    cost = pl.CostEstimate(flops=int(flops), transcendentals=0,
                           bytes_accessed=bytes_accessed)

    kernel = functools.partial(
        _fused_kernel, n_phase=len(phases), taps=taps, max_offs=max_offs,
        tile_t=tile_t, t_blocks=t_blocks, t_out=t_out, act=act,
        add_res=add_res, stage2=stage2)

    out = pl.pallas_call(
        kernel,
        out_shape=jax.ShapeDtypeStruct((N, cout, t_out_pad), COMPUTE_DTYPE),
        grid=(N, t_blocks),
        in_specs=in_specs,
        out_specs=pl.BlockSpec((1, cout, tile_t), lambda n, t: (n, 0, t)),
        compiler_params=pltpu.CompilerParams(
            dimension_semantics=("parallel", "parallel"),
            vmem_limit_bytes=VMEM_LIMIT_BYTES),
        cost_estimate=cost,
    )(*inputs)

    if t_out_pad != t_out:
        out = out[:, :, :t_out]
    return out


def upsample2(x):
    # nn.Upsample(scale_factor=2, mode='nearest') on the time axis (NCT).
    # TODO(synk): fold the nearest repeat into the next conv's taps (even/odd
    # weight folding) to avoid materializing the 2x activation in HBM.
    return jnp.repeat(x, 2, axis=2)


# ----------------------------------------------------------------------------
# Parameter prep (PyTorch Conv1d layout -> kernel layout) and forward pass
# ----------------------------------------------------------------------------
def _prep_conv(w, b):
    # (Cout, Cin, K) -> (K, Cout, Cin) bf16;  (Cout,) -> (Cout, 1) f32
    return (jnp.transpose(w, (2, 0, 1)).astype(COMPUTE_DTYPE),
            b.reshape(-1, 1).astype(jnp.float32))


def prepare_params(p):
    q = {}
    for name in ("inp", "d1", "d2", "u1", "u2", "out"):
        q[name + "_w"], q[name + "_b"] = _prep_conv(p[name + "_w"], p[name + "_b"])
    for name in ("d1_res", "d2_res", "u1_res"):
        r = p[name]
        w1, b1 = _prep_conv(r["w1"], r["b1"])
        w2, b2 = _prep_conv(r["w2"], r["b2"])
        q[name] = {"w1": w1, "b1": b1, "w2": w2, "b2": b2}
    return q


def unet_forward(x_nct, params):
    q = prepare_params(params)
    x = x_nct.astype(COMPUTE_DTYPE)                                  # NCT in
    # 1) inp conv
    x0 = fused_block_pallas(x, q["inp_w"], q["inp_b"])
    # 2) down1 = conv(s2) + leaky + ResBlock   (one pallas_call)
    x1 = fused_block_pallas(x0, q["d1_w"], q["d1_b"], stride=2, act="leaky",
                            stage2="res", stage2_params=q["d1_res"])
    # 3) down2 = conv(s2) + leaky + ResBlock   (one pallas_call)
    x2 = fused_block_pallas(x1, q["d2_w"], q["d2_b"], stride=2, act="leaky",
                            stage2="res", stage2_params=q["d2_res"])
    # 4) up1 = conv + leaky + skip(x1) + ResBlock   (one pallas_call)
    y2 = upsample2(x2)
    y2 = fused_block_pallas(y2, q["u1_w"], q["u1_b"], act="leaky",
                            residual=x1, stage2="res",
                            stage2_params=q["u1_res"])
    # 5) up2 + out = conv + leaky + skip(x0) + out-conv   (one pallas_call)
    y1 = upsample2(y2)
    y = fused_block_pallas(y1, q["u2_w"], q["u2_b"], act="leaky",
                           residual=x0, stage2="conv",
                           stage2_params=(q["out_w"], q["out_b"]))
    return y.astype(jnp.float32)                                     # NCT out


# ----------------------------------------------------------------------------
# Pure-JAX reference (lax.conv, f32) for a correctness check
# ----------------------------------------------------------------------------
def _conv_ref(x, w, b, stride=1, padding=1):
    out = lax.conv_general_dilated(
        x, w, (stride,), [(padding, padding)],
        dimension_numbers=("NCH", "OIH", "NCH"))
    return out + b[None, :, None]


def _leaky(x):
    return jnp.where(x >= 0.0, x, 0.2 * x)


def _resblock_ref(x, p):
    h = jnp.maximum(_conv_ref(x, p["w1"], p["b1"], 1, 1), 0.0)
    return _conv_ref(h, p["w2"], p["b2"], 1, 0) + x


def unet_forward_ref(x, p):
    x0 = _conv_ref(x, p["inp_w"], p["inp_b"])
    x1 = _resblock_ref(_leaky(_conv_ref(x0, p["d1_w"], p["d1_b"], 2, 1)), p["d1_res"])
    x2 = _resblock_ref(_leaky(_conv_ref(x1, p["d2_w"], p["d2_b"], 2, 1)), p["d2_res"])
    y2 = jnp.repeat(x2, 2, axis=2)
    y2 = _leaky(_conv_ref(y2, p["u1_w"], p["u1_b"], 1, 1)) + x1
    y2 = _resblock_ref(y2, p["u1_res"])
    y1 = jnp.repeat(y2, 2, axis=2)
    y1 = _leaky(_conv_ref(y1, p["u2_w"], p["u2_b"], 1, 1)) + x0
    return _conv_ref(y1, p["out_w"], p["out_b"])


# ----------------------------------------------------------------------------
# Deterministic parameter init + driver
# ----------------------------------------------------------------------------
def _conv_params(key, cin, cout, k):
    kw, kb = jax.random.split(key)
    w = 0.1 * jax.random.normal(kw, (cout, cin, k), jnp.float32)
    b = 0.05 * jax.random.normal(kb, (cout,), jnp.float32)
    return w, b


def _res_params(key, c):
    k1, k2 = jax.random.split(key)
    w1, b1 = _conv_params(k1, c, c, 3)
    w2, b2 = _conv_params(k2, c, c, 1)
    return {"w1": w1, "b1": b1, "w2": w2, "b2": b2}


def init_params(key, inp_channel, out_channel, channels):
    ks = jax.random.split(key, 8)
    p = {}
    p["inp_w"], p["inp_b"] = _conv_params(ks[0], inp_channel, channels[0], 3)
    p["d1_w"], p["d1_b"] = _conv_params(ks[1], channels[0], channels[1], 3)
    p["d1_res"] = _res_params(ks[2], channels[1])
    p["d2_w"], p["d2_b"] = _conv_params(ks[3], channels[1], channels[2], 3)
    p["d2_res"] = _res_params(ks[4], channels[2])
    p["u1_w"], p["u1_b"] = _conv_params(ks[5], channels[2], channels[1], 3)
    p["u1_res"] = _res_params(ks[6], channels[1])
    p["u2_w"], p["u2_b"] = _conv_params(ks[7], channels[1], channels[0], 3)
    kout = jax.random.fold_in(key, 99)
    p["out_w"], p["out_b"] = _conv_params(kout, channels[0], out_channel, 3)
    return p


if __name__ == "__main__":
    key = jax.random.PRNGKey(0)
    N, inp_channel, out_channel, T = 2, 4, 4, 16
    channels = [8, 16, 32]

    kx, kp = jax.random.split(key)
    x = jax.random.normal(kx, (N, inp_channel, T), jnp.float32)  # PyTorch NCT
    params = init_params(kp, inp_channel, out_channel, channels)

    fwd = jax.jit(unet_forward)
    y = jax.block_until_ready(fwd(x, params))
    assert y.shape == (N, out_channel, T), y.shape

    y_ref = jax.block_until_ready(unet_forward_ref(x, params))
    # bf16 MXU inputs with f32 accumulation -> loosened tolerance vs f32 ref.
    np.testing.assert_allclose(np.asarray(y, np.float32), np.asarray(y_ref),
                               rtol=3e-2, atol=3e-2)
    print("KERNEL_OK")
</pallas_src>

<mosaic_0001>
module attributes {stable_mosaic.version = 11 : i64} {
  func.func @_fused_kernel(%arg0: i32, %arg1: i32, %arg2: memref<1x4x20xbf16, #tpu.memory_space<vmem>>, %arg3: memref<3x8x4xbf16, #tpu.memory_space<vmem>>, %arg4: memref<8x1xf32, #tpu.memory_space<vmem>>, %arg5: memref<1x8x16xbf16, #tpu.memory_space<vmem>>) attributes {dimension_semantics = [#tpu.dimension_semantics<parallel>, #tpu.dimension_semantics<parallel>], iteration_bounds = array<i64: 2, 1>, scalar_prefetch = 0 : i64, scratch_operands = 0 : i64, tpu.core_type = #tpu.core_type<tc>, window_params = [{transform_indices = @transform_0, window_bounds = array<i64: 1, 4, 20>}, {pipeline_mode = #tpu.pipeline_mode<synchronous>, transform_indices = @transform_1, window_bounds = array<i64: 3, 8, 4>}, {pipeline_mode = #tpu.pipeline_mode<synchronous>, transform_indices = @transform_2, window_bounds = array<i64: 8, 1>}, {transform_indices = @transform_3, window_bounds = array<i64: 1, 8, 16>}]} {
    %c0 = arith.constant 0 : index
    %c0_0 = arith.constant 0 : index
    %c0_1 = arith.constant 0 : index
    %0 = vector.load %arg2[%c0, %c0_0, %c0_1] : memref<1x4x20xbf16, #tpu.memory_space<vmem>>, vector<1x4x20xbf16>
    %1 = vector.shape_cast %0 : vector<1x4x20xbf16> to vector<4x20xbf16>
    %c0_2 = arith.constant 0 : index
    %c0_3 = arith.constant 0 : index
    %2 = vector.load %arg4[%c0_2, %c0_3] : memref<8x1xf32, #tpu.memory_space<vmem>>, vector<8x1xf32>
    %3 = vector.shape_cast %2 : vector<8x1xf32> to vector<8x1xf32>
    %4 = vector.broadcast %3 : vector<8x1xf32> to vector<8x18xf32>
    %c0_4 = arith.constant 0 : index
    %c0_5 = arith.constant 0 : index
    %c0_6 = arith.constant 0 : index
    %5 = vector.load %arg3[%c0_4, %c0_5, %c0_6] : memref<3x8x4xbf16, #tpu.memory_space<vmem>>, vector<1x8x4xbf16>
    %6 = vector.shape_cast %5 : vector<1x8x4xbf16> to vector<8x4xbf16>
    %7 = vector.extract_strided_slice %1 {offsets = [0, 0], sizes = [4, 18], strides = [1, 1]} : vector<4x20xbf16> to vector<4x18xbf16>
    %cst = arith.constant dense<0.000000e+00> : vector<8x18xf32>
    %8 = tpu.matmul %6, %7, %cst {dimension_numbers = #tpu.dot_dimension_numbers<[1], [0], [0], [1], [0, 0, 1, 1], [], []>} : vector<8x4xbf16>, vector<4x18xbf16>, vector<8x18xf32> -> vector<8x18xf32>
    %9 = arith.addf %4, %8 : vector<8x18xf32>
    %c1 = arith.constant 1 : index
    %c0_7 = arith.constant 0 : index
    %c0_8 = arith.constant 0 : index
    %10 = vector.load %arg3[%c1, %c0_7, %c0_8] : memref<3x8x4xbf16, #tpu.memory_space<vmem>>, vector<1x8x4xbf16>
    %11 = vector.shape_cast %10 : vector<1x8x4xbf16> to vector<8x4xbf16>
    %12 = vector.extract_strided_slice %1 {offsets = [0, 1], sizes = [4, 18], strides = [1, 1]} : vector<4x20xbf16> to vector<4x18xbf16>
    %cst_9 = arith.constant dense<0.000000e+00> : vector<8x18xf32>
    %13 = tpu.matmul %11, %12, %cst_9 {dimension_numbers = #tpu.dot_dimension_numbers<[1], [0], [0], [1], [0, 0, 1, 1], [], []>} : vector<8x4xbf16>, vector<4x18xbf16>, vector<8x18xf32> -> vector<8x18xf32>
    %14 = arith.addf %9, %13 : vector<8x18xf32>
    %c2 = arith.constant 2 : index
    %c0_10 = arith.constant 0 : index
    %c0_11 = arith.constant 0 : index
    %15 = vector.load %arg3[%c2, %c0_10, %c0_11] : memref<3x8x4xbf16, #tpu.memory_space<vmem>>, vector<1x8x4xbf16>
    %16 = vector.shape_cast %15 : vector<1x8x4xbf16> to vector<8x4xbf16>
    %17 = vector.extract_strided_slice %1 {offsets = [0, 2], sizes = [4, 18], strides = [1, 1]} : vector<4x20xbf16> to vector<4x18xbf16>
    %cst_12 = arith.constant dense<0.000000e+00> : vector<8x18xf32>
    %18 = tpu.matmul %16, %17, %cst_12 {dimension_numbers = #tpu.dot_dimension_numbers<[1], [0], [0], [1], [0, 0, 1, 1], [], []>} : vector<8x4xbf16>, vector<4x18xbf16>, vector<8x18xf32> -> vector<8x18xf32>
    %19 = arith.addf %14, %18 : vector<8x18xf32>
    %20 = vector.extract_strided_slice %19 {offsets = [0, 1], sizes = [8, 16], strides = [1, 1]} : vector<8x18xf32> to vector<8x16xf32>
    %21 = arith.truncf %20 : vector<8x16xf32> to vector<8x16xbf16>
    %c0_13 = arith.constant 0 : index
    %c0_14 = arith.constant 0 : index
    %c0_15 = arith.constant 0 : index
    %22 = vector.load %arg5[%c0_13, %c0_14, %c0_15] : memref<1x8x16xbf16, #tpu.memory_space<vmem>>, vector<1x8x16xbf16>
    %23 = vector.shape_cast %22 : vector<1x8x16xbf16> to vector<8x16xbf16>
    %24 = vector.shape_cast %21 : vector<8x16xbf16> to vector<1x8x16xbf16>
    tpu.vector_store %arg5[%c0_13, %c0_14, %c0_15], %24 {strides = array<i32>} : memref<1x8x16xbf16, #tpu.memory_space<vmem>>, vector<1x8x16xbf16>,
    return
  }
  func.func @transform_0(%arg0: i32, %arg1: i32) -> (i32, i32, i32) {
    %c0_i32 = arith.constant 0 : i32
    %c0_i32_0 = arith.constant 0 : i32
    %c0_i32_1 = arith.constant 0 : i32
    return %arg0, %c0_i32, %c0_i32_0 : i32, i32, i32
  }
  func.func @transform_1(%arg0: i32, %arg1: i32) -> (i32, i32, i32) {
    %c0_i32 = arith.constant 0 : i32
    %c0_i32_0 = arith.constant 0 : i32
    %c0_i32_1 = arith.constant 0 : i32
    %c0_i32_2 = arith.constant 0 : i32
    return %c0_i32, %c0_i32_0, %c0_i32_1 : i32, i32, i32
  }
  func.func @transform_2(%arg0: i32, %arg1: i32) -> (i32, i32) {
    %c0_i32 = arith.constant 0 : i32
    %c0_i32_0 = arith.constant 0 : i32
    %c0_i32_1 = arith.constant 0 : i32
    return %c0_i32, %c0_i32_0 : i32, i32
  }
  func.func @transform_3(%arg0: i32, %arg1: i32) -> (i32, i32, i32) {
    %c0_i32 = arith.constant 0 : i32
    %c0_i32_0 = arith.constant 0 : i32
    return %arg0, %c0_i32, %arg1 : i32, i32, i32
  }
}

module attributes {stable_mosaic.version = 11 : i64} {
  func.func @_fused_kernel(%arg0: i32, %arg1: i32, %arg2: memref<1x8x11xbf16, #tpu.memory_space<vmem>>, %arg3: memref<1x8x10xbf16, #tpu.memory_space<vmem>>, %arg4: memref<3x16x8xbf16, #tpu.memory_space<vmem>>, %arg5: memref<16x1xf32, #tpu.memory_space<vmem>>, %arg6: memref<3x16x16xbf16, #tpu.memory_space<vmem>>, %arg7: memref<16x1xf32, #tpu.memory_space<vmem>>, %arg8: memref<1x16x16xbf16, #tpu.memory_space<vmem>>, %arg9: memref<16x1xf32, #tpu.memory_space<vmem>>, %arg10: memref<1x16x8xbf16, #tpu.memory_space<vmem>>) attributes {dimension_semantics = [#tpu.dimension_semantics<parallel>, #tpu.dimension_semantics<parallel>], iteration_bounds = array<i64: 2, 1>, scalar_prefetch = 0 : i64, scratch_operands = 0 : i64, tpu.core_type = #tpu.core_type<tc>, window_params = [{transform_indices = @transform_0, window_bounds = array<i64: 1, 8, 11>}, {transform_indices = @transform_1, window_bounds = array<i64: 1, 8, 10>}, {pipeline_mode = #tpu.pipeline_mode<synchronous>, transform_indices = @transform_2, window_bounds = array<i64: 3, 16, 8>}, {pipeline_mode = #tpu.pipeline_mode<synchronous>, transform_indices = @transform_3, window_bounds = array<i64: 16, 1>}, {pipeline_mode = #tpu.pipeline_mode<synchronous>, transform_indices = @transform_4, window_bounds = array<i64: 3, 16, 16>}, {pipeline_mode = #tpu.pipeline_mode<synchronous>, transform_indices = @transform_5, window_bounds = array<i64: 16, 1>}, {pipeline_mode = #tpu.pipeline_mode<synchronous>, transform_indices = @transform_6, window_bounds = array<i64: 1, 16, 16>}, {pipeline_mode = #tpu.pipeline_mode<synchronous>, transform_indices = @transform_7, window_bounds = array<i64: 16, 1>}, {transform_indices = @transform_8, window_bounds = array<i64: 1, 16, 8>}]} {
    %c0 = arith.constant 0 : index
    %c0_0 = arith.constant 0 : index
    %c0_1 = arith.constant 0 : index
    %0 = vector.load %arg2[%c0, %c0_0, %c0_1] : memref<1x8x11xbf16, #tpu.memory_space<vmem>>, vector<1x8x11xbf16>
    %1 = vector.shape_cast %0 : vector<1x8x11xbf16> to vector<8x11xbf16>
    %c0_2 = arith.constant 0 : index
    %c0_3 = arith.constant 0 : index
    %c0_4 = arith.constant 0 : index
    %2 = vector.load %arg3[%c0_2, %c0_3, %c0_4] : memref<1x8x10xbf16, #tpu.memory_space<vmem>>, vector<1x8x10xbf16>
    %3 = vector.shape_cast %2 : vector<1x8x10xbf16> to vector<8x10xbf16>
    %c0_5 = arith.constant 0 : index
    %c0_6 = arith.constant 0 : index
    %4 = vector.load %arg5[%c0_5, %c0_6] : memref<16x1xf32, #tpu.memory_space<vmem>>, vector<16x1xf32>
    %5 = vector.shape_cast %4 : vector<16x1xf32> to vector<16x1xf32>
    %6 = vector.broadcast %5 : vector<16x1xf32> to vector<16x10xf32>
    %c0_7 = arith.constant 0 : index
    %c0_8 = arith.constant 0 : index
    %c0_9 = arith.constant 0 : index
    %7 = vector.load %arg4[%c0_7, %c0_8, %c0_9] : memref<3x16x8xbf16, #tpu.memory_space<vmem>>, vector<1x16x8xbf16>
    %8 = vector.shape_cast %7 : vector<1x16x8xbf16> to vector<16x8xbf16>
    %9 = vector.extract_strided_slice %1 {offsets = [0, 0], sizes = [8, 10], strides = [1, 1]} : vector<8x11xbf16> to vector<8x10xbf16>
    %cst = arith.constant dense<0.000000e+00> : vector<16x10xf32>
    %10 = tpu.matmul %8, %9, %cst {dimension_numbers = #tpu.dot_dimension_numbers<[1], [0], [0], [1], [0, 0, 1, 1], [], []>} : vector<16x8xbf16>, vector<8x10xbf16>, vector<16x10xf32> -> vector<16x10xf32>
    %11 = arith.addf %6, %10 : vector<16x10xf32>
    %c1 = arith.constant 1 : index
    %c0_10 = arith.constant 0 : index
    %c0_11 = arith.constant 0 : index
    %12 = vector.load %arg4[%c1, %c0_10, %c0_11] : memref<3x16x8xbf16, #tpu.memory_space<vmem>>, vector<1x16x8xbf16>
    %13 = vector.shape_cast %12 : vector<1x16x8xbf16> to vector<16x8xbf16>
    %cst_12 = arith.constant dense<0.000000e+00> : vector<16x10xf32>
    %14 = tpu.matmul %13, %3, %cst_12 {dimension_numbers = #tpu.dot_dimension_numbers<[1], [0], [0], [1], [0, 0, 1, 1], [], []>} : vector<16x8xbf16>, vector<8x10xbf16>, vector<16x10xf32> -> vector<16x10xf32>
    %15 = arith.addf %11, %14 : vector<16x10xf32>
    %c2 = arith.constant 2 : index
    %c0_13 = arith.constant 0 : index
    %c0_14 = arith.constant 0 : index
    %16 = vector.load %arg4[%c2, %c0_13, %c0_14] : memref<3x16x8xbf16, #tpu.memory_space<vmem>>, vector<1x16x8xbf16>
    %17 = vector.shape_cast %16 : vector<1x16x8xbf16> to vector<16x8xbf16>
    %18 = vector.extract_strided_slice %1 {offsets = [0, 1], sizes = [8, 10], strides = [1, 1]} : vector<8x11xbf16> to vector<8x10xbf16>
    %cst_15 = arith.constant dense<0.000000e+00> : vector<16x10xf32>
    %19 = tpu.matmul %17, %18, %cst_15 {dimension_numbers = #tpu.dot_dimension_numbers<[1], [0], [0], [1], [0, 0, 1, 1], [], []>} : vector<16x8xbf16>, vector<8x10xbf16>, vector<16x10xf32> -> vector<16x10xf32>
    %20 = arith.addf %15, %19 : vector<16x10xf32>
    %cst_16 = arith.constant 0.000000e+00 : f32
    %21 = vector.broadcast %cst_16 : f32 to vector<16x10xf32>
    %22 = arith.cmpf oge, %20, %21 : vector<16x10xf32>
    %cst_17 = arith.constant 2.000000e-01 : f32
    %23 = vector.broadcast %cst_17 : f32 to vector<16x10xf32>
    %24 = arith.mulf %23, %20 : vector<16x10xf32>
    %25 = arith.select %22, %20, %24 : vector<16x10xi1>, vector<16x10xf32>
    %26 = tpu.iota {dimensions = array<i32: 1>} : vector<16x10xi32>
    %c-1_i32 = arith.constant -1 : i32
    %27 = vector.broadcast %c-1_i32 : i32 to vector<16x10xi32>
    %28 = arith.addi %27, %26 : vector<16x10xi32>
    %c0_i32 = arith.constant 0 : i32
    %29 = vector.broadcast %c0_i32 : i32 to vector<16x10xi32>
    %30 = arith.cmpi sge, %28, %29 : vector<16x10xi32>
    %c8_i32 = arith.constant 8 : i32
    %31 = vector.broadcast %c8_i32 : i32 to vector<16x10xi32>
    %32 = arith.cmpi slt, %28, %31 : vector<16x10xi32>
    %33 = arith.andi %30, %32 : vector<16x10xi1>
    %cst_18 = arith.constant 0.000000e+00 : f32
    %34 = vector.broadcast %cst_18 : f32 to vector<16x10xf32>
    %35 = arith.select %33, %25, %34 : vector<16x10xi1>, vector<16x10xf32>
    %36 = arith.truncf %35 : vector<16x10xf32> to vector<16x10xbf16>
    %c0_19 = arith.constant 0 : index
    %c0_20 = arith.constant 0 : index
    %37 = vector.load %arg7[%c0_19, %c0_20] : memref<16x1xf32, #tpu.memory_space<vmem>>, vector<16x1xf32>
    %38 = vector.shape_cast %37 : vector<16x1xf32> to vector<16x1xf32>
    %39 = vector.broadcast %38 : vector<16x1xf32> to vector<16x8xf32>
    %c0_21 = arith.constant 0 : index
    %c0_22 = arith.constant 0 : index
    %c0_23 = arith.constant 0 : index
    %40 = vector.load %arg6[%c0_21, %c0_22, %c0_23] : memref<3x16x16xbf16, #tpu.memory_space<vmem>>, vector<1x16x16xbf16>
    %41 = vector.shape_cast %40 : vector<1x16x16xbf16> to vector<16x16xbf16>
    %42 = vector.extract_strided_slice %36 {offsets = [0, 0], sizes = [16, 8], strides = [1, 1]} : vector<16x10xbf16> to vector<16x8xbf16>
    %cst_24 = arith.constant dense<0.000000e+00> : vector<16x8xf32>
    %43 = tpu.matmul %41, %42, %cst_24 {dimension_numbers = #tpu.dot_dimension_numbers<[1], [0], [0], [1], [0, 0, 1, 1], [], []>} : vector<16x16xbf16>, vector<16x8xbf16>, vector<16x8xf32> -> vector<16x8xf32>
    %44 = arith.addf %39, %43 : vector<16x8xf32>
    %c1_25 = arith.constant 1 : index
    %c0_26 = arith.constant 0 : index
    %c0_27 = arith.constant 0 : index
    %45 = vector.load %arg6[%c1_25, %c0_26, %c0_27] : memref<3x16x16xbf16, #tpu.memory_space<vmem>>, vector<1x16x16xbf16>
    %46 = vector.shape_cast %45 : vector<1x16x16xbf16> to vector<16x16xbf16>
    %47 = vector.extract_strided_slice %36 {offsets = [0, 1], sizes = [16, 8], strides = [1, 1]} : vector<16x10xbf16> to vector<16x8xbf16>
    %cst_28 = arith.constant dense<0.000000e+00> : vector<16x8xf32>
    %48 = tpu.matmul %46, %47, %cst_28 {dimension_numbers = #tpu.dot_dimension_numbers<[1], [0], [0], [1], [0, 0, 1, 1], [], []>} : vector<16x16xbf16>, vector<16x8xbf16>, vector<16x8xf32> -> vector<16x8xf32>
    %49 = arith.addf %44, %48 : vector<16x8xf32>
    %c2_29 = arith.constant 2 : index
    %c0_30 = arith.constant 0 : index
    %c0_31 = arith.constant 0 : index
    %50 = vector.load %arg6[%c2_29, %c0_30, %c0_31] : memref<3x16x16xbf16, #tpu.memory_space<vmem>>, vector<1x16x16xbf16>
    %51 = vector.shape_cast %50 : vector<1x16x16xbf16> to vector<16x16xbf16>
    %52 = vector.extract_strided_slice %36 {offsets = [0, 2], sizes = [16, 8], strides = [1, 1]} : vector<16x10xbf16> to vector<16x8xbf16>
    %cst_32 = arith.constant dense<0.000000e+00> : vector<16x8xf32>
    %53 = tpu.matmul %51, %52, %cst_32 {dimension_numbers = #tpu.dot_dimension_numbers<[1], [0], [0], [1], [0, 0, 1, 1], [], []>} : vector<16x16xbf16>, vector<16x8xbf16>, vector<16x8xf32> -> vector<16x8xf32>
    %54 = arith.addf %49, %53 : vector<16x8xf32>
    %cst_33 = arith.constant 0.000000e+00 : f32
    %55 = vector.broadcast %cst_33 : f32 to vector<16x8xf32>
    %56 = arith.maximumf %54, %55 : vector<16x8xf32>
    %57 = arith.truncf %56 : vector<16x8xf32> to vector<16x8xbf16>
    %c0_34 = arith.constant 0 : index
    %c0_35 = arith.constant 0 : index
    %c0_36 = arith.constant 0 : index
    %58 = vector.load %arg8[%c0_34, %c0_35, %c0_36] : memref<1x16x16xbf16, #tpu.memory_space<vmem>>, vector<1x16x16xbf16>
    %59 = vector.shape_cast %58 : vector<1x16x16xbf16> to vector<16x16xbf16>
    %cst_37 = arith.constant dense<0.000000e+00> : vector<16x8xf32>
    %60 = tpu.matmul %59, %57, %cst_37 {dimension_numbers = #tpu.dot_dimension_numbers<[1], [0], [0], [1], [0, 0, 1, 1], [], []>} : vector<16x16xbf16>, vector<16x8xbf16>, vector<16x8xf32> -> vector<16x8xf32>
    %c0_38 = arith.constant 0 : index
    %c0_39 = arith.constant 0 : index
    %61 = vector.load %arg9[%c0_38, %c0_39] : memref<16x1xf32, #tpu.memory_space<vmem>>, vector<16x1xf32>
    %62 = vector.broadcast %61 : vector<16x1xf32> to vector<16x8xf32>
    %63 = arith.addf %60, %62 : vector<16x8xf32>
    %64 = vector.extract_strided_slice %35 {offsets = [0, 1], sizes = [16, 8], strides = [1, 1]} : vector<16x10xf32> to vector<16x8xf32>
    %65 = arith.addf %63, %64 : vector<16x8xf32>
    %66 = arith.truncf %65 : vector<16x8xf32> to vector<16x8xbf16>
    %c0_40 = arith.constant 0 : index
    %c0_41 = arith.constant 0 : index
    %c0_42 = arith.constant 0 : index
    %67 = vector.load %arg10[%c0_40, %c0_41, %c0_42] : memref<1x16x8xbf16, #tpu.memory_space<vmem>>, vector<1x16x8xbf16>
    %68 = vector.shape_cast %67 : vector<1x16x8xbf16> to vector<16x8xbf16>
    %69 = vector.shape_cast %66 : vector<16x8xbf16> to vector<1x16x8xbf16>
    tpu.vector_store %arg10[%c0_40, %c0_41, %c0_42], %69 {strides = array<i32>} : memref<1x16x8xbf16, #tpu.memory_space<vmem>>, vector<1x16x8xbf16>,
    return
  }
  func.func @transform_0(%arg0: i32, %arg1: i32) -> (i32, i32, i32) {
    %c0_i32 = arith.constant 0 : i32
    %c0_i32_0 = arith.constant 0 : i32
    %c0_i32_1 = arith.constant 0 : i32
    return %arg0, %c0_i32, %c0_i32_0 : i32, i32, i32
  }
  func.func @transform_1(%arg0: i32, %arg1: i32) -> (i32, i32, i32) {
    %c0_i32 = arith.constant 0 : i32
    %c0_i32_0 = arith.constant 0 : i32
    %c0_i32_1 = arith.constant 0 : i32
    return %arg0, %c0_i32, %c0_i32_0 : i32, i32, i32
  }
  func.func @transform_2(%arg0: i32, %arg1: i32) -> (i32, i32, i32) {
    %c0_i32 = arith.constant 0 : i32
    %c0_i32_0 = arith.constant 0 : i32
    %c0_i32_1 = arith.constant 0 : i32
    %c0_i32_2 = arith.constant 0 : i32
    return %c0_i32, %c0_i32_0, %c0_i32_1 : i32, i32, i32
  }
  func.func @transform_3(%arg0: i32, %arg1: i32) -> (i32, i32) {
    %c0_i32 = arith.constant 0 : i32
    %c0_i32_0 = arith.constant 0 : i32
    %c0_i32_1 = arith.constant 0 : i32
    return %c0_i32, %c0_i32_0 : i32, i32
  }
  func.func @transform_4(%arg0: i32, %arg1: i32) -> (i32, i32, i32) {
    %c0_i32 = arith.constant 0 : i32
    %c0_i32_0 = arith.constant 0 : i32
    %c0_i32_1 = arith.constant 0 : i32
    %c0_i32_2 = arith.constant 0 : i32
    return %c0_i32, %c0_i32_0, %c0_i32_1 : i32, i32, i32
  }
  func.func @transform_5(%arg0: i32, %arg1: i32) -> (i32, i32) {
    %c0_i32 = arith.constant 0 : i32
    %c0_i32_0 = arith.constant 0 : i32
    %c0_i32_1 = arith.constant 0 : i32
    return %c0_i32, %c0_i32_0 : i32, i32
  }
  func.func @transform_6(%arg0: i32, %arg1: i32) -> (i32, i32, i32) {
    %c0_i32 = arith.constant 0 : i32
    %c0_i32_0 = arith.constant 0 : i32
    %c0_i32_1 = arith.constant 0 : i32
    %c0_i32_2 = arith.constant 0 : i32
    return %c0_i32, %c0_i32_0, %c0_i32_1 : i32, i32, i32
  }
  func.func @transform_7(%arg0: i32, %arg1: i32) -> (i32, i32) {
    %c0_i32 = arith.constant 0 : i32
    %c0_i32_0 = arith.constant 0 : i32
    %c0_i32_1 = arith.constant 0 : i32
    return %c0_i32, %c0_i32_0 : i32, i32
  }
  func.func @transform_8(%arg0: i32, %arg1: i32) -> (i32, i32, i32) {
    %c0_i32 = arith.constant 0 : i32
    %c0_i32_0 = arith.constant 0 : i32
    return %arg0, %c0_i32, %arg1 : i32, i32, i32
  }
}

module attributes {stable_mosaic.version = 11 : i64} {
  func.func @_fused_kernel(%arg0: i32, %arg1: i32, %arg2: memref<1x16x7xbf16, #tpu.memory_space<vmem>>, %arg3: memref<1x16x6xbf16, #tpu.memory_space<vmem>>, %arg4: memref<3x32x16xbf16, #tpu.memory_space<vmem>>, %arg5: memref<32x1xf32, #tpu.memory_space<vmem>>, %arg6: memref<3x32x32xbf16, #tpu.memory_space<vmem>>, %arg7: memref<32x1xf32, #tpu.memory_space<vmem>>, %arg8: memref<1x32x32xbf16, #tpu.memory_space<vmem>>, %arg9: memref<32x1xf32, #tpu.memory_space<vmem>>, %arg10: memref<1x32x4xbf16, #tpu.memory_space<vmem>>) attributes {dimension_semantics = [#tpu.dimension_semantics<parallel>, #tpu.dimension_semantics<parallel>], iteration_bounds = array<i64: 2, 1>, scalar_prefetch = 0 : i64, scratch_operands = 0 : i64, tpu.core_type = #tpu.core_type<tc>, window_params = [{transform_indices = @transform_0, window_bounds = array<i64: 1, 16, 7>}, {transform_indices = @transform_1, window_bounds = array<i64: 1, 16, 6>}, {pipeline_mode = #tpu.pipeline_mode<synchronous>, transform_indices = @transform_2, window_bounds = array<i64: 3, 32, 16>}, {pipeline_mode = #tpu.pipeline_mode<synchronous>, transform_indices = @transform_3, window_bounds = array<i64: 32, 1>}, {pipeline_mode = #tpu.pipeline_mode<synchronous>, transform_indices = @transform_4, window_bounds = array<i64: 3, 32, 32>}, {pipeline_mode = #tpu.pipeline_mode<synchronous>, transform_indices = @transform_5, window_bounds = array<i64: 32, 1>}, {pipeline_mode = #tpu.pipeline_mode<synchronous>, transform_indices = @transform_6, window_bounds = array<i64: 1, 32, 32>}, {pipeline_mode = #tpu.pipeline_mode<synchronous>, transform_indices = @transform_7, window_bounds = array<i64: 32, 1>}, {transform_indices = @transform_8, window_bounds = array<i64: 1, 32, 4>}]} {
    %c0 = arith.constant 0 : index
    %c0_0 = arith.constant 0 : index
    %c0_1 = arith.constant 0 : index
    %0 = vector.load %arg2[%c0, %c0_0, %c0_1] : memref<1x16x7xbf16, #tpu.memory_space<vmem>>, vector<1x16x7xbf16>
    %1 = vector.shape_cast %0 : vector<1x16x7xbf16> to vector<16x7xbf16>
    %c0_2 = arith.constant 0 : index
    %c0_3 = arith.constant 0 : index
    %c0_4 = arith.constant 0 : index
    %2 = vector.load %arg3[%c0_2, %c0_3, %c0_4] : memref<1x16x6xbf16, #tpu.memory_space<vmem>>, vector<1x16x6xbf16>
    %3 = vector.shape_cast %2 : vector<1x16x6xbf16> to vector<16x6xbf16>
    %c0_5 = arith.constant 0 : index
    %c0_6 = arith.constant 0 : index
    %4 = vector.load %arg5[%c0_5, %c0_6] : memref<32x1xf32, #tpu.memory_space<vmem>>, vector<32x1xf32>
    %5 = vector.shape_cast %4 : vector<32x1xf32> to vector<32x1xf32>
    %6 = vector.broadcast %5 : vector<32x1xf32> to vector<32x6xf32>
    %c0_7 = arith.constant 0 : index
    %c0_8 = arith.constant 0 : index
    %c0_9 = arith.constant 0 : index
    %7 = vector.load %arg4[%c0_7, %c0_8, %c0_9] : memref<3x32x16xbf16, #tpu.memory_space<vmem>>, vector<1x32x16xbf16>
    %8 = vector.shape_cast %7 : vector<1x32x16xbf16> to vector<32x16xbf16>
    %9 = vector.extract_strided_slice %1 {offsets = [0, 0], sizes = [16, 6], strides = [1, 1]} : vector<16x7xbf16> to vector<16x6xbf16>
    %cst = arith.constant dense<0.000000e+00> : vector<32x6xf32>
    %10 = tpu.matmul %8, %9, %cst {dimension_numbers = #tpu.dot_dimension_numbers<[1], [0], [0], [1], [0, 0, 1, 1], [], []>} : vector<32x16xbf16>, vector<16x6xbf16>, vector<32x6xf32> -> vector<32x6xf32>
    %11 = arith.addf %6, %10 : vector<32x6xf32>
    %c1 = arith.constant 1 : index
    %c0_10 = arith.constant 0 : index
    %c0_11 = arith.constant 0 : index
    %12 = vector.load %arg4[%c1, %c0_10, %c0_11] : memref<3x32x16xbf16, #tpu.memory_space<vmem>>, vector<1x32x16xbf16>
    %13 = vector.shape_cast %12 : vector<1x32x16xbf16> to vector<32x16xbf16>
    %cst_12 = arith.constant dense<0.000000e+00> : vector<32x6xf32>
    %14 = tpu.matmul %13, %3, %cst_12 {dimension_numbers = #tpu.dot_dimension_numbers<[1], [0], [0], [1], [0, 0, 1, 1], [], []>} : vector<32x16xbf16>, vector<16x6xbf16>, vector<32x6xf32> -> vector<32x6xf32>
    %15 = arith.addf %11, %14 : vector<32x6xf32>
    %c2 = arith.constant 2 : index
    %c0_13 = arith.constant 0 : index
    %c0_14 = arith.constant 0 : index
    %16 = vector.load %arg4[%c2, %c0_13, %c0_14] : memref<3x32x16xbf16, #tpu.memory_space<vmem>>, vector<1x32x16xbf16>
    %17 = vector.shape_cast %16 : vector<1x32x16xbf16> to vector<32x16xbf16>
    %18 = vector.extract_strided_slice %1 {offsets = [0, 1], sizes = [16, 6], strides = [1, 1]} : vector<16x7xbf16> to vector<16x6xbf16>
    %cst_15 = arith.constant dense<0.000000e+00> : vector<32x6xf32>
    %19 = tpu.matmul %17, %18, %cst_15 {dimension_numbers = #tpu.dot_dimension_numbers<[1], [0], [0], [1], [0, 0, 1, 1], [], []>} : vector<32x16xbf16>, vector<16x6xbf16>, vector<32x6xf32> -> vector<32x6xf32>
    %20 = arith.addf %15, %19 : vector<32x6xf32>
    %cst_16 = arith.constant 0.000000e+00 : f32
    %21 = vector.broadcast %cst_16 : f32 to vector<32x6xf32>
    %22 = arith.cmpf oge, %20, %21 : vector<32x6xf32>
    %cst_17 = arith.constant 2.000000e-01 : f32
    %23 = vector.broadcast %cst_17 : f32 to vector<32x6xf32>
    %24 = arith.mulf %23, %20 : vector<32x6xf32>
    %25 = arith.select %22, %20, %24 : vector<32x6xi1>, vector<32x6xf32>
    %26 = tpu.iota {dimensions = array<i32: 1>} : vector<32x6xi32>
    %c-1_i32 = arith.constant -1 : i32
    %27 = vector.broadcast %c-1_i32 : i32 to vector<32x6xi32>
    %28 = arith.addi %27, %26 : vector<32x6xi32>
    %c0_i32 = arith.constant 0 : i32
    %29 = vector.broadcast %c0_i32 : i32 to vector<32x6xi32>
    %30 = arith.cmpi sge, %28, %29 : vector<32x6xi32>
    %c4_i32 = arith.constant 4 : i32
    %31 = vector.broadcast %c4_i32 : i32 to vector<32x6xi32>
    %32 = arith.cmpi slt, %28, %31 : vector<32x6xi32>
    %33 = arith.andi %30, %32 : vector<32x6xi1>
    %cst_18 = arith.constant 0.000000e+00 : f32
    %34 = vector.broadcast %cst_18 : f32 to vector<32x6xf32>
    %35 = arith.select %33, %25, %34 : vector<32x6xi1>, vector<32x6xf32>
    %36 = arith.truncf %35 : vector<32x6xf32> to vector<32x6xbf16>
    %c0_19 = arith.constant 0 : index
    %c0_20 = arith.constant 0 : index
    %37 = vector.load %arg7[%c0_19, %c0_20] : memref<32x1xf32, #tpu.memory_space<vmem>>, vector<32x1xf32>
    %38 = vector.shape_cast %37 : vector<32x1xf32> to vector<32x1xf32>
    %39 = vector.broadcast %38 : vector<32x1xf32> to vector<32x4xf32>
    %c0_21 = arith.constant 0 : index
    %c0_22 = arith.constant 0 : index
    %c0_23 = arith.constant 0 : index
    %40 = vector.load %arg6[%c0_21, %c0_22, %c0_23] : memref<3x32x32xbf16, #tpu.memory_space<vmem>>, vector<1x32x32xbf16>
    %41 = vector.shape_cast %40 : vector<1x32x32xbf16> to vector<32x32xbf16>
    %42 = vector.extract_strided_slice %36 {offsets = [0, 0], sizes = [32, 4], strides = [1, 1]} : vector<32x6xbf16> to vector<32x4xbf16>
    %cst_24 = arith.constant dense<0.000000e+00> : vector<32x4xf32>
    %43 = tpu.matmul %41, %42, %cst_24 {dimension_numbers = #tpu.dot_dimension_numbers<[1], [0], [0], [1], [0, 0, 1, 1], [], []>} : vector<32x32xbf16>, vector<32x4xbf16>, vector<32x4xf32> -> vector<32x4xf32>
    %44 = arith.addf %39, %43 : vector<32x4xf32>
    %c1_25 = arith.constant 1 : index
    %c0_26 = arith.constant 0 : index
    %c0_27 = arith.constant 0 : index
    %45 = vector.load %arg6[%c1_25, %c0_26, %c0_27] : memref<3x32x32xbf16, #tpu.memory_space<vmem>>, vector<1x32x32xbf16>
    %46 = vector.shape_cast %45 : vector<1x32x32xbf16> to vector<32x32xbf16>
    %47 = vector.extract_strided_slice %36 {offsets = [0, 1], sizes = [32, 4], strides = [1, 1]} : vector<32x6xbf16> to vector<32x4xbf16>
    %cst_28 = arith.constant dense<0.000000e+00> : vector<32x4xf32>
    %48 = tpu.matmul %46, %47, %cst_28 {dimension_numbers = #tpu.dot_dimension_numbers<[1], [0], [0], [1], [0, 0, 1, 1], [], []>} : vector<32x32xbf16>, vector<32x4xbf16>, vector<32x4xf32> -> vector<32x4xf32>
    %49 = arith.addf %44, %48 : vector<32x4xf32>
    %c2_29 = arith.constant 2 : index
    %c0_30 = arith.constant 0 : index
    %c0_31 = arith.constant 0 : index
    %50 = vector.load %arg6[%c2_29, %c0_30, %c0_31] : memref<3x32x32xbf16, #tpu.memory_space<vmem>>, vector<1x32x32xbf16>
    %51 = vector.shape_cast %50 : vector<1x32x32xbf16> to vector<32x32xbf16>
    %52 = vector.extract_strided_slice %36 {offsets = [0, 2], sizes = [32, 4], strides = [1, 1]} : vector<32x6xbf16> to vector<32x4xbf16>
    %cst_32 = arith.constant dense<0.000000e+00> : vector<32x4xf32>
    %53 = tpu.matmul %51, %52, %cst_32 {dimension_numbers = #tpu.dot_dimension_numbers<[1], [0], [0], [1], [0, 0, 1, 1], [], []>} : vector<32x32xbf16>, vector<32x4xbf16>, vector<32x4xf32> -> vector<32x4xf32>
    %54 = arith.addf %49, %53 : vector<32x4xf32>
    %cst_33 = arith.constant 0.000000e+00 : f32
    %55 = vector.broadcast %cst_33 : f32 to vector<32x4xf32>
    %56 = arith.maximumf %54, %55 : vector<32x4xf32>
    %57 = arith.truncf %56 : vector<32x4xf32> to vector<32x4xbf16>
    %c0_34 = arith.constant 0 : index
    %c0_35 = arith.constant 0 : index
    %c0_36 = arith.constant 0 : index
    %58 = vector.load %arg8[%c0_34, %c0_35, %c0_36] : memref<1x32x32xbf16, #tpu.memory_space<vmem>>, vector<1x32x32xbf16>
    %59 = vector.shape_cast %58 : vector<1x32x32xbf16> to vector<32x32xbf16>
    %cst_37 = arith.constant dense<0.000000e+00> : vector<32x4xf32>
    %60 = tpu.matmul %59, %57, %cst_37 {dimension_numbers = #tpu.dot_dimension_numbers<[1], [0], [0], [1], [0, 0, 1, 1], [], []>} : vector<32x32xbf16>, vector<32x4xbf16>, vector<32x4xf32> -> vector<32x4xf32>
    %c0_38 = arith.constant 0 : index
    %c0_39 = arith.constant 0 : index
    %61 = vector.load %arg9[%c0_38, %c0_39] : memref<32x1xf32, #tpu.memory_space<vmem>>, vector<32x1xf32>
    %62 = vector.broadcast %61 : vector<32x1xf32> to vector<32x4xf32>
    %63 = arith.addf %60, %62 : vector<32x4xf32>
    %64 = vector.extract_strided_slice %35 {offsets = [0, 1], sizes = [32, 4], strides = [1, 1]} : vector<32x6xf32> to vector<32x4xf32>
    %65 = arith.addf %63, %64 : vector<32x4xf32>
    %66 = arith.truncf %65 : vector<32x4xf32> to vector<32x4xbf16>
    %c0_40 = arith.constant 0 : index
    %c0_41 = arith.constant 0 : index
    %c0_42 = arith.constant 0 : index
    %67 = vector.load %arg10[%c0_40, %c0_41, %c0_42] : memref<1x32x4xbf16, #tpu.memory_space<vmem>>, vector<1x32x4xbf16>
    %68 = vector.shape_cast %67 : vector<1x32x4xbf16> to vector<32x4xbf16>
    %69 = vector.shape_cast %66 : vector<32x4xbf16> to vector<1x32x4xbf16>
    tpu.vector_store %arg10[%c0_40, %c0_41, %c0_42], %69 {strides = array<i32>} : memref<1x32x4xbf16, #tpu.memory_space<vmem>>, vector<1x32x4xbf16>,
    return
  }
  func.func @transform_0(%arg0: i32, %arg1: i32) -> (i32, i32, i32) {
    %c0_i32 = arith.constant 0 : i32
    %c0_i32_0 = arith.constant 0 : i32
    %c0_i32_1 = arith.constant 0 : i32
    return %arg0, %c0_i32, %c0_i32_0 : i32, i32, i32
  }
  func.func @transform_1(%arg0: i32, %arg1: i32) -> (i32, i32, i32) {
    %c0_i32 = arith.constant 0 : i32
    %c0_i32_0 = arith.constant 0 : i32
    %c0_i32_1 = arith.constant 0 : i32
    return %arg0, %c0_i32, %c0_i32_0 : i32, i32, i32
  }
  func.func @transform_2(%arg0: i32, %arg1: i32) -> (i32, i32, i32) {
    %c0_i32 = arith.constant 0 : i32
    %c0_i32_0 = arith.constant 0 : i32
    %c0_i32_1 = arith.constant 0 : i32
    %c0_i32_2 = arith.constant 0 : i32
    return %c0_i32, %c0_i32_0, %c0_i32_1 : i32, i32, i32
  }
  func.func @transform_3(%arg0: i32, %arg1: i32) -> (i32, i32) {
    %c0_i32 = arith.constant 0 : i32
    %c0_i32_0 = arith.constant 0 : i32
    %c0_i32_1 = arith.constant 0 : i32
    return %c0_i32, %c0_i32_0 : i32, i32
  }
  func.func @transform_4(%arg0: i32, %arg1: i32) -> (i32, i32, i32) {
    %c0_i32 = arith.constant 0 : i32
    %c0_i32_0 = arith.constant 0 : i32
    %c0_i32_1 = arith.constant 0 : i32
    %c0_i32_2 = arith.constant 0 : i32
    return %c0_i32, %c0_i32_0, %c0_i32_1 : i32, i32, i32
  }
  func.func @transform_5(%arg0: i32, %arg1: i32) -> (i32, i32) {
    %c0_i32 = arith.constant 0 : i32
    %c0_i32_0 = arith.constant 0 : i32
    %c0_i32_1 = arith.constant 0 : i32
    return %c0_i32, %c0_i32_0 : i32, i32
  }
  func.func @transform_6(%arg0: i32, %arg1: i32) -> (i32, i32, i32) {
    %c0_i32 = arith.constant 0 : i32
    %c0_i32_0 = arith.constant 0 : i32
    %c0_i32_1 = arith.constant 0 : i32
    %c0_i32_2 = arith.constant 0 : i32
    return %c0_i32, %c0_i32_0, %c0_i32_1 : i32, i32, i32
  }
  func.func @transform_7(%arg0: i32, %arg1: i32) -> (i32, i32) {
    %c0_i32 = arith.constant 0 : i32
    %c0_i32_0 = arith.constant 0 : i32
    %c0_i32_1 = arith.constant 0 : i32
    return %c0_i32, %c0_i32_0 : i32, i32
  }
  func.func @transform_8(%arg0: i32, %arg1: i32) -> (i32, i32, i32) {
    %c0_i32 = arith.constant 0 : i32
    %c0_i32_0 = arith.constant 0 : i32
    return %arg0, %c0_i32, %arg1 : i32, i32, i32
  }
}

module attributes {stable_mosaic.version = 11 : i64} {
  func.func @_fused_kernel(%arg0: i32, %arg1: i32, %arg2: memref<1x32x12xbf16, #tpu.memory_space<vmem>>, %arg3: memref<3x16x32xbf16, #tpu.memory_space<vmem>>, %arg4: memref<16x1xf32, #tpu.memory_space<vmem>>, %arg5: memref<1x16x10xbf16, #tpu.memory_space<vmem>>, %arg6: memref<3x16x16xbf16, #tpu.memory_space<vmem>>, %arg7: memref<16x1xf32, #tpu.memory_space<vmem>>, %arg8: memref<1x16x16xbf16, #tpu.memory_space<vmem>>, %arg9: memref<16x1xf32, #tpu.memory_space<vmem>>, %arg10: memref<1x16x8xbf16, #tpu.memory_space<vmem>>) attributes {dimension_semantics = [#tpu.dimension_semantics<parallel>, #tpu.dimension_semantics<parallel>], iteration_bounds = array<i64: 2, 1>, scalar_prefetch = 0 : i64, scratch_operands = 0 : i64, tpu.core_type = #tpu.core_type<tc>, window_params = [{transform_indices = @transform_0, window_bounds = array<i64: 1, 32, 12>}, {pipeline_mode = #tpu.pipeline_mode<synchronous>, transform_indices = @transform_1, window_bounds = array<i64: 3, 16, 32>}, {pipeline_mode = #tpu.pipeline_mode<synchronous>, transform_indices = @transform_2, window_bounds = array<i64: 16, 1>}, {transform_indices = @transform_3, window_bounds = array<i64: 1, 16, 10>}, {pipeline_mode = #tpu.pipeline_mode<synchronous>, transform_indices = @transform_4, window_bounds = array<i64: 3, 16, 16>}, {pipeline_mode = #tpu.pipeline_mode<synchronous>, transform_indices = @transform_5, window_bounds = array<i64: 16, 1>}, {pipeline_mode = #tpu.pipeline_mode<synchronous>, transform_indices = @transform_6, window_bounds = array<i64: 1, 16, 16>}, {pipeline_mode = #tpu.pipeline_mode<synchronous>, transform_indices = @transform_7, window_bounds = array<i64: 16, 1>}, {transform_indices = @transform_8, window_bounds = array<i64: 1, 16, 8>}]} {
    %c0 = arith.constant 0 : index
    %c0_0 = arith.constant 0 : index
    %c0_1 = arith.constant 0 : index
    %0 = vector.load %arg2[%c0, %c0_0, %c0_1] : memref<1x32x12xbf16, #tpu.memory_space<vmem>>, vector<1x32x12xbf16>
    %1 = vector.shape_cast %0 : vector<1x32x12xbf16> to vector<32x12xbf16>
    %c0_2 = arith.constant 0 : index
    %c0_3 = arith.constant 0 : index
    %c0_4 = arith.constant 0 : index
    %2 = vector.load %arg5[%c0_2, %c0_3, %c0_4] : memref<1x16x10xbf16, #tpu.memory_space<vmem>>, vector<1x16x10xbf16>
    %3 = vector.shape_cast %2 : vector<1x16x10xbf16> to vector<16x10xbf16>
    %c0_5 = arith.constant 0 : index
    %c0_6 = arith.constant 0 : index
    %4 = vector.load %arg4[%c0_5, %c0_6] : memref<16x1xf32, #tpu.memory_space<vmem>>, vector<16x1xf32>
    %5 = vector.shape_cast %4 : vector<16x1xf32> to vector<16x1xf32>
    %6 = vector.broadcast %5 : vector<16x1xf32> to vector<16x10xf32>
    %c0_7 = arith.constant 0 : index
    %c0_8 = arith.constant 0 : index
    %c0_9 = arith.constant 0 : index
    %7 = vector.load %arg3[%c0_7, %c0_8, %c0_9] : memref<3x16x32xbf16, #tpu.memory_space<vmem>>, vector<1x16x32xbf16>
    %8 = vector.shape_cast %7 : vector<1x16x32xbf16> to vector<16x32xbf16>
    %9 = vector.extract_strided_slice %1 {offsets = [0, 0], sizes = [32, 10], strides = [1, 1]} : vector<32x12xbf16> to vector<32x10xbf16>
    %cst = arith.constant dense<0.000000e+00> : vector<16x10xf32>
    %10 = tpu.matmul %8, %9, %cst {dimension_numbers = #tpu.dot_dimension_numbers<[1], [0], [0], [1], [0, 0, 1, 1], [], []>} : vector<16x32xbf16>, vector<32x10xbf16>, vector<16x10xf32> -> vector<16x10xf32>
    %11 = arith.addf %6, %10 : vector<16x10xf32>
    %c1 = arith.constant 1 : index
    %c0_10 = arith.constant 0 : index
    %c0_11 = arith.constant 0 : index
    %12 = vector.load %arg3[%c1, %c0_10, %c0_11] : memref<3x16x32xbf16, #tpu.memory_space<vmem>>, vector<1x16x32xbf16>
    %13 = vector.shape_cast %12 : vector<1x16x32xbf16> to vector<16x32xbf16>
    %14 = vector.extract_strided_slice %1 {offsets = [0, 1], sizes = [32, 10], strides = [1, 1]} : vector<32x12xbf16> to vector<32x10xbf16>
    %cst_12 = arith.constant dense<0.000000e+00> : vector<16x10xf32>
    %15 = tpu.matmul %13, %14, %cst_12 {dimension_numbers = #tpu.dot_dimension_numbers<[1], [0], [0], [1], [0, 0, 1, 1], [], []>} : vector<16x32xbf16>, vector<32x10xbf16>, vector<16x10xf32> -> vector<16x10xf32>
    %16 = arith.addf %11, %15 : vector<16x10xf32>
    %c2 = arith.constant 2 : index
    %c0_13 = arith.constant 0 : index
    %c0_14 = arith.constant 0 : index
    %17 = vector.load %arg3[%c2, %c0_13, %c0_14] : memref<3x16x32xbf16, #tpu.memory_space<vmem>>, vector<1x16x32xbf16>
    %18 = vector.shape_cast %17 : vector<1x16x32xbf16> to vector<16x32xbf16>
    %19 = vector.extract_strided_slice %1 {offsets = [0, 2], sizes = [32, 10], strides = [1, 1]} : vector<32x12xbf16> to vector<32x10xbf16>
    %cst_15 = arith.constant dense<0.000000e+00> : vector<16x10xf32>
    %20 = tpu.matmul %18, %19, %cst_15 {dimension_numbers = #tpu.dot_dimension_numbers<[1], [0], [0], [1], [0, 0, 1, 1], [], []>} : vector<16x32xbf16>, vector<32x10xbf16>, vector<16x10xf32> -> vector<16x10xf32>
    %21 = arith.addf %16, %20 : vector<16x10xf32>
    %cst_16 = arith.constant 0.000000e+00 : f32
    %22 = vector.broadcast %cst_16 : f32 to vector<16x10xf32>
    %23 = arith.cmpf oge, %21, %22 : vector<16x10xf32>
    %cst_17 = arith.constant 2.000000e-01 : f32
    %24 = vector.broadcast %cst_17 : f32 to vector<16x10xf32>
    %25 = arith.mulf %24, %21 : vector<16x10xf32>
    %26 = arith.select %23, %21, %25 : vector<16x10xi1>, vector<16x10xf32>
    %27 = arith.extf %3 : vector<16x10xbf16> to vector<16x10xf32>
    %28 = arith.addf %26, %27 : vector<16x10xf32>
    %29 = tpu.iota {dimensions = array<i32: 1>} : vector<16x10xi32>
    %c-1_i32 = arith.constant -1 : i32
    %30 = vector.broadcast %c-1_i32 : i32 to vector<16x10xi32>
    %31 = arith.addi %30, %29 : vector<16x10xi32>
    %c0_i32 = arith.constant 0 : i32
    %32 = vector.broadcast %c0_i32 : i32 to vector<16x10xi32>
    %33 = arith.cmpi sge, %31, %32 : vector<16x10xi32>
    %c8_i32 = arith.constant 8 : i32
    %34 = vector.broadcast %c8_i32 : i32 to vector<16x10xi32>
    %35 = arith.cmpi slt, %31, %34 : vector<16x10xi32>
    %36 = arith.andi %33, %35 : vector<16x10xi1>
    %cst_18 = arith.constant 0.000000e+00 : f32
    %37 = vector.broadcast %cst_18 : f32 to vector<16x10xf32>
    %38 = arith.select %36, %28, %37 : vector<16x10xi1>, vector<16x10xf32>
    %39 = arith.truncf %38 : vector<16x10xf32> to vector<16x10xbf16>
    %c0_19 = arith.constant 0 : index
    %c0_20 = arith.constant 0 : index
    %40 = vector.load %arg7[%c0_19, %c0_20] : memref<16x1xf32, #tpu.memory_space<vmem>>, vector<16x1xf32>
    %41 = vector.shape_cast %40 : vector<16x1xf32> to vector<16x1xf32>
    %42 = vector.broadcast %41 : vector<16x1xf32> to vector<16x8xf32>
    %c0_21 = arith.constant 0 : index
    %c0_22 = arith.constant 0 : index
    %c0_23 = arith.constant 0 : index
    %43 = vector.load %arg6[%c0_21, %c0_22, %c0_23] : memref<3x16x16xbf16, #tpu.memory_space<vmem>>, vector<1x16x16xbf16>
    %44 = vector.shape_cast %43 : vector<1x16x16xbf16> to vector<16x16xbf16>
    %45 = vector.extract_strided_slice %39 {offsets = [0, 0], sizes = [16, 8], strides = [1, 1]} : vector<16x10xbf16> to vector<16x8xbf16>
    %cst_24 = arith.constant dense<0.000000e+00> : vector<16x8xf32>
    %46 = tpu.matmul %44, %45, %cst_24 {dimension_numbers = #tpu.dot_dimension_numbers<[1], [0], [0], [1], [0, 0, 1, 1], [], []>} : vector<16x16xbf16>, vector<16x8xbf16>, vector<16x8xf32> -> vector<16x8xf32>
    %47 = arith.addf %42, %46 : vector<16x8xf32>
    %c1_25 = arith.constant 1 : index
    %c0_26 = arith.constant 0 : index
    %c0_27 = arith.constant 0 : index
    %48 = vector.load %arg6[%c1_25, %c0_26, %c0_27] : memref<3x16x16xbf16, #tpu.memory_space<vmem>>, vector<1x16x16xbf16>
    %49 = vector.shape_cast %48 : vector<1x16x16xbf16> to vector<16x16xbf16>
    %50 = vector.extract_strided_slice %39 {offsets = [0, 1], sizes = [16, 8], strides = [1, 1]} : vector<16x10xbf16> to vector<16x8xbf16>
    %cst_28 = arith.constant dense<0.000000e+00> : vector<16x8xf32>
    %51 = tpu.matmul %49, %50, %cst_28 {dimension_numbers = #tpu.dot_dimension_numbers<[1], [0], [0], [1], [0, 0, 1, 1], [], []>} : vector<16x16xbf16>, vector<16x8xbf16>, vector<16x8xf32> -> vector<16x8xf32>
    %52 = arith.addf %47, %51 : vector<16x8xf32>
    %c2_29 = arith.constant 2 : index
    %c0_30 = arith.constant 0 : index
    %c0_31 = arith.constant 0 : index
    %53 = vector.load %arg6[%c2_29, %c0_30, %c0_31] : memref<3x16x16xbf16, #tpu.memory_space<vmem>>, vector<1x16x16xbf16>
    %54 = vector.shape_cast %53 : vector<1x16x16xbf16> to vector<16x16xbf16>
    %55 = vector.extract_strided_slice %39 {offsets = [0, 2], sizes = [16, 8], strides = [1, 1]} : vector<16x10xbf16> to vector<16x8xbf16>
    %cst_32 = arith.constant dense<0.000000e+00> : vector<16x8xf32>
    %56 = tpu.matmul %54, %55, %cst_32 {dimension_numbers = #tpu.dot_dimension_numbers<[1], [0], [0], [1], [0, 0, 1, 1], [], []>} : vector<16x16xbf16>, vector<16x8xbf16>, vector<16x8xf32> -> vector<16x8xf32>
    %57 = arith.addf %52, %56 : vector<16x8xf32>
    %cst_33 = arith.constant 0.000000e+00 : f32
    %58 = vector.broadcast %cst_33 : f32 to vector<16x8xf32>
    %59 = arith.maximumf %57, %58 : vector<16x8xf32>
    %60 = arith.truncf %59 : vector<16x8xf32> to vector<16x8xbf16>
    %c0_34 = arith.constant 0 : index
    %c0_35 = arith.constant 0 : index
    %c0_36 = arith.constant 0 : index
    %61 = vector.load %arg8[%c0_34, %c0_35, %c0_36] : memref<1x16x16xbf16, #tpu.memory_space<vmem>>, vector<1x16x16xbf16>
    %62 = vector.shape_cast %61 : vector<1x16x16xbf16> to vector<16x16xbf16>
    %cst_37 = arith.constant dense<0.000000e+00> : vector<16x8xf32>
    %63 = tpu.matmul %62, %60, %cst_37 {dimension_numbers = #tpu.dot_dimension_numbers<[1], [0], [0], [1], [0, 0, 1, 1], [], []>} : vector<16x16xbf16>, vector<16x8xbf16>, vector<16x8xf32> -> vector<16x8xf32>
    %c0_38 = arith.constant 0 : index
    %c0_39 = arith.constant 0 : index
    %64 = vector.load %arg9[%c0_38, %c0_39] : memref<16x1xf32, #tpu.memory_space<vmem>>, vector<16x1xf32>
    %65 = vector.broadcast %64 : vector<16x1xf32> to vector<16x8xf32>
    %66 = arith.addf %63, %65 : vector<16x8xf32>
    %67 = vector.extract_strided_slice %38 {offsets = [0, 1], sizes = [16, 8], strides = [1, 1]} : vector<16x10xf32> to vector<16x8xf32>
    %68 = arith.addf %66, %67 : vector<16x8xf32>
    %69 = arith.truncf %68 : vector<16x8xf32> to vector<16x8xbf16>
    %c0_40 = arith.constant 0 : index
    %c0_41 = arith.constant 0 : index
    %c0_42 = arith.constant 0 : index
    %70 = vector.load %arg10[%c0_40, %c0_41, %c0_42] : memref<1x16x8xbf16, #tpu.memory_space<vmem>>, vector<1x16x8xbf16>
    %71 = vector.shape_cast %70 : vector<1x16x8xbf16> to vector<16x8xbf16>
    %72 = vector.shape_cast %69 : vector<16x8xbf16> to vector<1x16x8xbf16>
    tpu.vector_store %arg10[%c0_40, %c0_41, %c0_42], %72 {strides = array<i32>} : memref<1x16x8xbf16, #tpu.memory_space<vmem>>, vector<1x16x8xbf16>,
    return
  }
  func.func @transform_0(%arg0: i32, %arg1: i32) -> (i32, i32, i32) {
    %c0_i32 = arith.constant 0 : i32
    %c0_i32_0 = arith.constant 0 : i32
    %c0_i32_1 = arith.constant 0 : i32
    return %arg0, %c0_i32, %c0_i32_0 : i32, i32, i32
  }
  func.func @transform_1(%arg0: i32, %arg1: i32) -> (i32, i32, i32) {
    %c0_i32 = arith.constant 0 : i32
    %c0_i32_0 = arith.constant 0 : i32
    %c0_i32_1 = arith.constant 0 : i32
    %c0_i32_2 = arith.constant 0 : i32
    return %c0_i32, %c0_i32_0, %c0_i32_1 : i32, i32, i32
  }
  func.func @transform_2(%arg0: i32, %arg1: i32) -> (i32, i32) {
    %c0_i32 = arith.constant 0 : i32
    %c0_i32_0 = arith.constant 0 : i32
    %c0_i32_1 = arith.constant 0 : i32
    return %c0_i32, %c0_i32_0 : i32, i32
  }
  func.func @transform_3(%arg0: i32, %arg1: i32) -> (i32, i32, i32) {
    %c0_i32 = arith.constant 0 : i32
    %c0_i32_0 = arith.constant 0 : i32
    %c0_i32_1 = arith.constant 0 : i32
    return %arg0, %c0_i32, %c0_i32_0 : i32, i32, i32
  }
  func.func @transform_4(%arg0: i32, %arg1: i32) -> (i32, i32, i32) {
    %c0_i32 = arith.constant 0 : i32
    %c0_i32_0 = arith.constant 0 : i32
    %c0_i32_1 = arith.constant 0 : i32
    %c0_i32_2 = arith.constant 0 : i32
    return %c0_i32, %c0_i32_0, %c0_i32_1 : i32, i32, i32
  }
  func.func @transform_5(%arg0: i32, %arg1: i32) -> (i32, i32) {
    %c0_i32 = arith.constant 0 : i32
    %c0_i32_0 = arith.constant 0 : i32
    %c0_i32_1 = arith.constant 0 : i32
    return %c0_i32, %c0_i32_0 : i32, i32
  }
  func.func @transform_6(%arg0: i32, %arg1: i32) -> (i32, i32, i32) {
    %c0_i32 = arith.constant 0 : i32
    %c0_i32_0 = arith.constant 0 : i32
    %c0_i32_1 = arith.constant 0 : i32
    %c0_i32_2 = arith.constant 0 : i32
    return %c0_i32, %c0_i32_0, %c0_i32_1 : i32, i32, i32
  }
  func.func @transform_7(%arg0: i32, %arg1: i32) -> (i32, i32) {
    %c0_i32 = arith.constant 0 : i32
    %c0_i32_0 = arith.constant 0 : i32
    %c0_i32_1 = arith.constant 0 : i32
    return %c0_i32, %c0_i32_0 : i32, i32
  }
  func.func @transform_8(%arg0: i32, %arg1: i32) -> (i32, i32, i32) {
    %c0_i32 = arith.constant 0 : i32
    %c0_i32_0 = arith.constant 0 : i32
    return %arg0, %c0_i32, %arg1 : i32, i32, i32
  }
}

module attributes {stable_mosaic.version = 11 : i64} {
  func.func @_fused_kernel(%arg0: i32, %arg1: i32, %arg2: memref<1x16x20xbf16, #tpu.memory_space<vmem>>, %arg3: memref<3x8x16xbf16, #tpu.memory_space<vmem>>, %arg4: memref<8x1xf32, #tpu.memory_space<vmem>>, %arg5: memref<1x8x18xbf16, #tpu.memory_space<vmem>>, %arg6: memref<3x4x8xbf16, #tpu.memory_space<vmem>>, %arg7: memref<4x1xf32, #tpu.memory_space<vmem>>, %arg8: memref<1x4x16xbf16, #tpu.memory_space<vmem>>) attributes {dimension_semantics = [#tpu.dimension_semantics<parallel>, #tpu.dimension_semantics<parallel>], iteration_bounds = array<i64: 2, 1>, scalar_prefetch = 0 : i64, scratch_operands = 0 : i64, tpu.core_type = #tpu.core_type<tc>, window_params = [{transform_indices = @transform_0, window_bounds = array<i64: 1, 16, 20>}, {pipeline_mode = #tpu.pipeline_mode<synchronous>, transform_indices = @transform_1, window_bounds = array<i64: 3, 8, 16>}, {pipeline_mode = #tpu.pipeline_mode<synchronous>, transform_indices = @transform_2, window_bounds = array<i64: 8, 1>}, {transform_indices = @transform_3, window_bounds = array<i64: 1, 8, 18>}, {pipeline_mode = #tpu.pipeline_mode<synchronous>, transform_indices = @transform_4, window_bounds = array<i64: 3, 4, 8>}, {pipeline_mode = #tpu.pipeline_mode<synchronous>, transform_indices = @transform_5, window_bounds = array<i64: 4, 1>}, {transform_indices = @transform_6, window_bounds = array<i64: 1, 4, 16>}]} {
    %c0 = arith.constant 0 : index
    %c0_0 = arith.constant 0 : index
    %c0_1 = arith.constant 0 : index
    %0 = vector.load %arg2[%c0, %c0_0, %c0_1] : memref<1x16x20xbf16, #tpu.memory_space<vmem>>, vector<1x16x20xbf16>
    %1 = vector.shape_cast %0 : vector<1x16x20xbf16> to vector<16x20xbf16>
    %c0_2 = arith.constant 0 : index
    %c0_3 = arith.constant 0 : index
    %c0_4 = arith.constant 0 : index
    %2 = vector.load %arg5[%c0_2, %c0_3, %c0_4] : memref<1x8x18xbf16, #tpu.memory_space<vmem>>, vector<1x8x18xbf16>
    %3 = vector.shape_cast %2 : vector<1x8x18xbf16> to vector<8x18xbf16>
    %c0_5 = arith.constant 0 : index
    %c0_6 = arith.constant 0 : index
    %4 = vector.load %arg4[%c0_5, %c0_6] : memref<8x1xf32, #tpu.memory_space<vmem>>, vector<8x1xf32>
    %5 = vector.shape_cast %4 : vector<8x1xf32> to vector<8x1xf32>
    %6 = vector.broadcast %5 : vector<8x1xf32> to vector<8x18xf32>
    %c0_7 = arith.constant 0 : index
    %c0_8 = arith.constant 0 : index
    %c0_9 = arith.constant 0 : index
    %7 = vector.load %arg3[%c0_7, %c0_8, %c0_9] : memref<3x8x16xbf16, #tpu.memory_space<vmem>>, vector<1x8x16xbf16>
    %8 = vector.shape_cast %7 : vector<1x8x16xbf16> to vector<8x16xbf16>
    %9 = vector.extract_strided_slice %1 {offsets = [0, 0], sizes = [16, 18], strides = [1, 1]} : vector<16x20xbf16> to vector<16x18xbf16>
    %cst = arith.constant dense<0.000000e+00> : vector<8x18xf32>
    %10 = tpu.matmul %8, %9, %cst {dimension_numbers = #tpu.dot_dimension_numbers<[1], [0], [0], [1], [0, 0, 1, 1], [], []>} : vector<8x16xbf16>, vector<16x18xbf16>, vector<8x18xf32> -> vector<8x18xf32>
    %11 = arith.addf %6, %10 : vector<8x18xf32>
    %c1 = arith.constant 1 : index
    %c0_10 = arith.constant 0 : index
    %c0_11 = arith.constant 0 : index
    %12 = vector.load %arg3[%c1, %c0_10, %c0_11] : memref<3x8x16xbf16, #tpu.memory_space<vmem>>, vector<1x8x16xbf16>
    %13 = vector.shape_cast %12 : vector<1x8x16xbf16> to vector<8x16xbf16>
    %14 = vector.extract_strided_slice %1 {offsets = [0, 1], sizes = [16, 18], strides = [1, 1]} : vector<16x20xbf16> to vector<16x18xbf16>
    %cst_12 = arith.constant dense<0.000000e+00> : vector<8x18xf32>
    %15 = tpu.matmul %13, %14, %cst_12 {dimension_numbers = #tpu.dot_dimension_numbers<[1], [0], [0], [1], [0, 0, 1, 1], [], []>} : vector<8x16xbf16>, vector<16x18xbf16>, vector<8x18xf32> -> vector<8x18xf32>
    %16 = arith.addf %11, %15 : vector<8x18xf32>
    %c2 = arith.constant 2 : index
    %c0_13 = arith.constant 0 : index
    %c0_14 = arith.constant 0 : index
    %17 = vector.load %arg3[%c2, %c0_13, %c0_14] : memref<3x8x16xbf16, #tpu.memory_space<vmem>>, vector<1x8x16xbf16>
    %18 = vector.shape_cast %17 : vector<1x8x16xbf16> to vector<8x16xbf16>
    %19 = vector.extract_strided_slice %1 {offsets = [0, 2], sizes = [16, 18], strides = [1, 1]} : vector<16x20xbf16> to vector<16x18xbf16>
    %cst_15 = arith.constant dense<0.000000e+00> : vector<8x18xf32>
    %20 = tpu.matmul %18, %19, %cst_15 {dimension_numbers = #tpu.dot_dimension_numbers<[1], [0], [0], [1], [0, 0, 1, 1], [], []>} : vector<8x16xbf16>, vector<16x18xbf16>, vector<8x18xf32> -> vector<8x18xf32>
    %21 = arith.addf %16, %20 : vector<8x18xf32>
    %cst_16 = arith.constant 0.000000e+00 : f32
    %22 = vector.broadcast %cst_16 : f32 to vector<8x18xf32>
    %23 = arith.cmpf oge, %21, %22 : vector<8x18xf32>
    %cst_17 = arith.constant 2.000000e-01 : f32
    %24 = vector.broadcast %cst_17 : f32 to vector<8x18xf32>
    %25 = arith.mulf %24, %21 : vector<8x18xf32>
    %26 = arith.select %23, %21, %25 : vector<8x18xi1>, vector<8x18xf32>
    %27 = arith.extf %3 : vector<8x18xbf16> to vector<8x18xf32>
    %28 = arith.addf %26, %27 : vector<8x18xf32>
    %29 = tpu.iota {dimensions = array<i32: 1>} : vector<8x18xi32>
    %c-1_i32 = arith.constant -1 : i32
    %30 = vector.broadcast %c-1_i32 : i32 to vector<8x18xi32>
    %31 = arith.addi %30, %29 : vector<8x18xi32>
    %c0_i32 = arith.constant 0 : i32
    %32 = vector.broadcast %c0_i32 : i32 to vector<8x18xi32>
    %33 = arith.cmpi sge, %31, %32 : vector<8x18xi32>
    %c16_i32 = arith.constant 16 : i32
    %34 = vector.broadcast %c16_i32 : i32 to vector<8x18xi32>
    %35 = arith.cmpi slt, %31, %34 : vector<8x18xi32>
    %36 = arith.andi %33, %35 : vector<8x18xi1>
    %cst_18 = arith.constant 0.000000e+00 : f32
    %37 = vector.broadcast %cst_18 : f32 to vector<8x18xf32>
    %38 = arith.select %36, %28, %37 : vector<8x18xi1>, vector<8x18xf32>
    %39 = arith.truncf %38 : vector<8x18xf32> to vector<8x18xbf16>
    %c0_19 = arith.constant 0 : index
    %c0_20 = arith.constant 0 : index
    %40 = vector.load %arg7[%c0_19, %c0_20] : memref<4x1xf32, #tpu.memory_space<vmem>>, vector<4x1xf32>
    %41 = vector.shape_cast %40 : vector<4x1xf32> to vector<4x1xf32>
    %42 = vector.broadcast %41 : vector<4x1xf32> to vector<4x16xf32>
    %c0_21 = arith.constant 0 : index
    %c0_22 = arith.constant 0 : index
    %c0_23 = arith.constant 0 : index
    %43 = vector.load %arg6[%c0_21, %c0_22, %c0_23] : memref<3x4x8xbf16, #tpu.memory_space<vmem>>, vector<1x4x8xbf16>
    %44 = vector.shape_cast %43 : vector<1x4x8xbf16> to vector<4x8xbf16>
    %45 = vector.extract_strided_slice %39 {offsets = [0, 0], sizes = [8, 16], strides = [1, 1]} : vector<8x18xbf16> to vector<8x16xbf16>
    %cst_24 = arith.constant dense<0.000000e+00> : vector<4x16xf32>
    %46 = tpu.matmul %44, %45, %cst_24 {dimension_numbers = #tpu.dot_dimension_numbers<[1], [0], [0], [1], [0, 0, 1, 1], [], []>} : vector<4x8xbf16>, vector<8x16xbf16>, vector<4x16xf32> -> vector<4x16xf32>
    %47 = arith.addf %42, %46 : vector<4x16xf32>
    %c1_25 = arith.constant 1 : index
    %c0_26 = arith.constant 0 : index
    %c0_27 = arith.constant 0 : index
    %48 = vector.load %arg6[%c1_25, %c0_26, %c0_27] : memref<3x4x8xbf16, #tpu.memory_space<vmem>>, vector<1x4x8xbf16>
    %49 = vector.shape_cast %48 : vector<1x4x8xbf16> to vector<4x8xbf16>
    %50 = vector.extract_strided_slice %39 {offsets = [0, 1], sizes = [8, 16], strides = [1, 1]} : vector<8x18xbf16> to vector<8x16xbf16>
    %cst_28 = arith.constant dense<0.000000e+00> : vector<4x16xf32>
    %51 = tpu.matmul %49, %50, %cst_28 {dimension_numbers = #tpu.dot_dimension_numbers<[1], [0], [0], [1], [0, 0, 1, 1], [], []>} : vector<4x8xbf16>, vector<8x16xbf16>, vector<4x16xf32> -> vector<4x16xf32>
    %52 = arith.addf %47, %51 : vector<4x16xf32>
    %c2_29 = arith.constant 2 : index
    %c0_30 = arith.constant 0 : index
    %c0_31 = arith.constant 0 : index
    %53 = vector.load %arg6[%c2_29, %c0_30, %c0_31] : memref<3x4x8xbf16, #tpu.memory_space<vmem>>, vector<1x4x8xbf16>
    %54 = vector.shape_cast %53 : vector<1x4x8xbf16> to vector<4x8xbf16>
    %55 = vector.extract_strided_slice %39 {offsets = [0, 2], sizes = [8, 16], strides = [1, 1]} : vector<8x18xbf16> to vector<8x16xbf16>
    %cst_32 = arith.constant dense<0.000000e+00> : vector<4x16xf32>
    %56 = tpu.matmul %54, %55, %cst_32 {dimension_numbers = #tpu.dot_dimension_numbers<[1], [0], [0], [1], [0, 0, 1, 1], [], []>} : vector<4x8xbf16>, vector<8x16xbf16>, vector<4x16xf32> -> vector<4x16xf32>
    %57 = arith.addf %52, %56 : vector<4x16xf32>
    %58 = arith.truncf %57 : vector<4x16xf32> to vector<4x16xbf16>
    %c0_33 = arith.constant 0 : index
    %c0_34 = arith.constant 0 : index
    %c0_35 = arith.constant 0 : index
    %59 = vector.load %arg8[%c0_33, %c0_34, %c0_35] : memref<1x4x16xbf16, #tpu.memory_space<vmem>>, vector<1x4x16xbf16>
    %60 = vector.shape_cast %59 : vector<1x4x16xbf16> to vector<4x16xbf16>
    %61 = vector.shape_cast %58 : vector<4x16xbf16> to vector<1x4x16xbf16>
    tpu.vector_store %arg8[%c0_33, %c0_34, %c0_35], %61 {strides = array<i32>} : memref<1x4x16xbf16, #tpu.memory_space<vmem>>, vector<1x4x16xbf16>,
    return
  }
  func.func @transform_0(%arg0: i32, %arg1: i32) -> (i32, i32, i32) {
    %c0_i32 = arith.constant 0 : i32
    %c0_i32_0 = arith.constant 0 : i32
    %c0_i32_1 = arith.constant 0 : i32
    return %arg0, %c0_i32, %c0_i32_0 : i32, i32, i32
  }
  func.func @transform_1(%arg0: i32, %arg1: i32) -> (i32, i32, i32) {
    %c0_i32 = arith.constant 0 : i32
    %c0_i32_0 = arith.constant 0 : i32
    %c0_i32_1 = arith.constant 0 : i32
    %c0_i32_2 = arith.constant 0 : i32
    return %c0_i32, %c0_i32_0, %c0_i32_1 : i32, i32, i32
  }
  func.func @transform_2(%arg0: i32, %arg1: i32) -> (i32, i32) {
    %c0_i32 = arith.constant 0 : i32
    %c0_i32_0 = arith.constant 0 : i32
    %c0_i32_1 = arith.constant 0 : i32
    return %c0_i32, %c0_i32_0 : i32, i32
  }
  func.func @transform_3(%arg0: i32, %arg1: i32) -> (i32, i32, i32) {
    %c0_i32 = arith.constant 0 : i32
    %c0_i32_0 = arith.constant 0 : i32
    %c0_i32_1 = arith.constant 0 : i32
    return %arg0, %c0_i32, %c0_i32_0 : i32, i32, i32
  }
  func.func @transform_4(%arg0: i32, %arg1: i32) -> (i32, i32, i32) {
    %c0_i32 = arith.constant 0 : i32
    %c0_i32_0 = arith.constant 0 : i32
    %c0_i32_1 = arith.constant 0 : i32
    %c0_i32_2 = arith.constant 0 : i32
    return %c0_i32, %c0_i32_0, %c0_i32_1 : i32, i32, i32
  }
  func.func @transform_5(%arg0: i32, %arg1: i32) -> (i32, i32) {
    %c0_i32 = arith.constant 0 : i32
    %c0_i32_0 = arith.constant 0 : i32
    %c0_i32_1 = arith.constant 0 : i32
    return %c0_i32, %c0_i32_0 : i32, i32
  }
  func.func @transform_6(%arg0: i32, %arg1: i32) -> (i32, i32, i32) {
    %c0_i32 = arith.constant 0 : i32
    %c0_i32_0 = arith.constant 0 : i32
    return %arg0, %c0_i32, %arg1 : i32, i32, i32
  }
}

</mosaic_0001>

<bundles_post_ra>
// kernel: unet_forward.5
= control target key start
LH: loop header
LB: loop body
LE: loop exit
PB: predicated region body
PF: predicated region fallthrough
CT: control target
= control target key end

     0   :  { %s562_s12 = smov 0   ;;  %s564_s13 = smov 0   ;;  %s622_s0 = inlined_call_operand.vmem [shape: bf16[2,4,20], index: 0, kind: input, shape index: {}]   ;;  %s623_s1 = inlined_call_operand.vmem [shape: bf16[3,8,4], index: 1, kind: input, shape index: {}]   ;;  %s624_s2 = inlined_call_operand.vmem [shape: f32[8,1], index: 2, kind: input, shape index: {}]   ;;  %s625_s3 = inlined_call_operand.vmem [shape: bf16[2,8,16], index: 3, kind: output, shape index: {}]  }
   0x1   :  { %s566_s14 = smov 0  }
   0x2 LB: > { %s25_s15 = sadd.s32 1, %s530_s13  ;;  %p438_p0 = scmp.ge.s32.totalorder %s534_s14, 1  ;;  %s534_s14 = sphi %s566_s14, %s13_s14   ;;  %s530_s13 = sphi %s564_s13, %s627_s13   ;;  %s526_s12 = sphi %s562_s12, %s626_s12  }
   0x3   : > { %p27_p1 = scmp.ge.s32.totalorder %s25_s15, 2  ;;  %p150_p2 = scmp.lt.s32.totalorder %s534_s14, 3 }
   0x5   : > { %s629_s15 = smov (%p27_p1, %s25_s15), 0  ;;  %p151_p3 = pnand %p438_p0, %p150_p2 }
   0x6   : > { %p175_p4 = scmp.lt.s32.totalorder (!%p151_p3), %s526_s12, 1  ;;  %v250_v0 = vlaneseq (!%p151_p3)  ;;  %v536_v1 = vmov (!%p151_p3), 1983009808   ;;  %v537_v3 = vmov (!%p151_p3), 0.0   ;;  %vm538_vm0 = vmmov (!%p151_p3), 0   ;;  %s539_s22 = smov (!%p151_p3), 127  }
   0x7   : > { %154 = sbr.rel (%p151_p3) target bundleno = 483 (0x1e3), region = 32  ;;  %v248_v2 = vunpack.c.l.s4 (!%p151_p3), %v536_v1  ;;  %462 = vmatprep.subr.bf16.mxu0 (!%p151_p3), %v537_v3  ;;  %456 = vmatprep.subr.bf16.mxu1 (!%p151_p3), %v537_v3  ;;  %vm199_vm1 = vcmask (!%p151_p3), 1041408   ;;  %v194_v10 = vld [vmem:[%s623_s1] sm:$0xf] (!%p151_p3)  ;;  %vm195_vm2 = vcmask (!%p151_p3), 31744   ;;  %s540_s25 = smov (!%p151_p3), 126  }
   0x8   : > { %v251_v4 = vshrl.u32 (!%p151_p3), %v250_v0, 7  ;;  %464 = vmatprep.mubr.msk.bf16.mxu0 (!%p151_p3), %vm538_vm0, %v537_v3  ;;  %458 = vmatprep.mubr.msk.bf16.mxu1 (!%p151_p3), %vm538_vm0, %v537_v3  ;;  %v188_v11 = vld [vmem:[%s624_s2] sm:$0xff] (!%p151_p3)  ;;  %v541_v12 = vmov (!%p151_p3), 0   ;;  %v444_v18 = vld [vmem:[%s623_s1 + $0x8] sm:$0xf] (!%p151_p3)  ;;  %vm361_vm3 = vcmask (!%p151_p3), 125952  }
   0x9   : > { %v249_v5 = vunpack.c.0.s8 (!%p151_p3), %v248_v2  ;;  %510 = vset.pattern.permute.xlu1 (!%p151_p3), %v541_v12  ;;  %511 = vset.pattern.permute.xlu0 (!%p151_p3), %v541_v12  ;;  %v442_v15 = vld [vmem:[%s623_s1 + $0x4] sm:$0xf] (!%p151_p3) }
   0xa   : > { %191 = vperm.xlu1 (!%p151_p3), %510, %v188_v11  }
   0xb   : > { %v252_v6 = vsub.s32 (!%p151_p3), %v249_v5, %v251_v4 }
   0xe   : > { %s631_s12 = smov (!%p175_p4, %s526_s12), 1 }
   0xf   : > { %s439_s16 = sshll.u32 %s631_s12, 1  ;;  %s440_s30 = sshll.u32 %s631_s12, 2 }
  0x10   : > { %s178_s19 = scalar_lea.vmem %s622_s0, %s439_s16  ;;  %s185_s6 = scalar_lea.vmem %s625_s3, %s440_s30 }
  0x11   : > { %v187_v7 = vld [vmem:[%s178_s19] sm:$0x3] }
  0x12   : > { %v253_v8 = vrot.slane %v187_v7, %v252_v6  ;;  %v201_v9 = vsel %vm199_vm1, %v187_v7, 0 }
  0x13   : > { %457 = vmatpush3.bf16.msra.mxu1 %v201_v9 }
  0x14   : > { %254 = vrot.lane.b32.xlu0 %v253_v8, %s539_s22 }
  0x16   : > { %459 = vmatmul.mubr.msk.bf16.vlgmr.msra.gmra.mrb[0].mxu1 %vm195_vm2, %v194_v10 }
  0x18   : > { %305 = vrot.lane.b32.xlu0 %v253_v8, %s540_s25 }
  0x86   : > { %v255_v13 = vpop.permute.xlu0 %254 }
  0x87   : > { %v260_v14 = vsel %vm199_vm1, %v255_v13, 0 }
  0x88   : > { %463 = vmatpush3.bf16.msra.mxu0 %v260_v14 }
  0x89   : > { %468 = vmatprep.subr.bf16.mxu0 %v537_v3  ;;  %v192_v23 = vpop.permute.xlu1 %191 }
  0x8a   : > { %v306_v16 = vpop.permute.xlu0 %305 }
  0x8b   : > { %v311_v17 = vsel %vm199_vm1, %v306_v16, 0  ;;  %465 = vmatmul.mubr.msk.bf16.vlgmr.msra.gmra.mrb[0].mxu0 %vm195_vm2, %v442_v15 }
  0x8c   : > { %469 = vmatpush3.bf16.msra.mxu0 %v311_v17  ;;  %470 = vmatprep.mubr.msk.bf16.mxu0 %vm538_vm0, %v537_v3 }
  0x97   : > { %471 = vmatmul.mubr.msk.bf16.vlgmr.msra.gmra.mrb[0].mxu0 %vm195_vm2, %v444_v18 }
  0xe9   : > { %v237_v19 = vpop.f32.mrb[0].mxu1 }
  0xea   : > { %v460_v20 = vpop.f32.mrb[1].mxu1  ;;  %v243_v24 = vadd.f32 %v237_v19, %v192_v23 }
  0xeb   : > { %v240_v21 = vpop.f32.mrb[2].mxu1 }
  0xec   : > { %v461_v22 = vpop.f32.mrb[3].mxu1 }
 0x16a   : > { %v347_v25 = vpop.f32.mrb[0].mxu0 }
 0x16b   : > { %v475_v26 = vadd.f32 %v347_v25, %v243_v24  ;;  %v472_v27 = vpop.f32.mrb[1].mxu0 }
 0x16c   : > { %v350_v28 = vpop.f32.mrb[2].mxu0 }
 0x16d   : > { %v449_v29 = vpack.c.bf16 %v475_v26, %v475_v26  ;;  %v473_v30 = vpop.f32.mrb[3].mxu0 }
 0x16f   : > { %358 = vrot.lane.b32.xlu1 %v449_v29, %s539_s22 }
 0x1e1   : > { %v359_v31 = vpop.permute.xlu1 %358 }
 0x1e2   : > { %362 = vst.msk [vmem:[%s185_s6] sm:$0xf] %vm361_vm3, %v359_v31 }
 0x1e3 PF: > { %s13_s14 = sadd.s32 1, %s534_s14   ;;  %s626_s12 = smov %s530_s13 }
 0x1e4   : > { %p10_p5 = scmp.ge.s32.totalorder %s13_s14, 4   ;;  %s627_s13 = smov %s629_s15 }
 0x1e6   :  { %12 = sbr.rel (!%p10_p5) target bundleno = 2 (0x2), region = 64 }

// kernel: unet_forward.6
= control target key start
LH: loop header
LB: loop body
LE: loop exit
PB: predicated region body
PF: predicated region fallthrough
CT: control target
= control target key end

     0   :  { %s1135_s27 = smov 0   ;;  %s1137_s28 = smov 0   ;;  %s1249_s0 = inlined_call_operand.vmem [shape: bf16[2,8,11], index: 0, kind: input, shape index: {}]   ;;  %s1250_s1 = inlined_call_operand.vmem [shape: bf16[2,8,10], index: 1, kind: input, shape index: {}]   ;;  %s1251_s2 = inlined_call_operand.vmem [shape: bf16[3,16,8], index: 2, kind: input, shape index: {}]   ;;  %s1252_s3 = inlined_call_operand.vmem [shape: f32[16,1], index: 3, kind: input, shape index: {}]   ;;  %s1253_s4 = inlined_call_operand.vmem [shape: bf16[3,16,16], index: 4, kind: input, shape index: {}]   ;;  %s1254_s5 = inlined_call_operand.vmem [shape: f32[16,1], index: 5, kind: input, shape index: {}]   ;;  %s1255_s6 = inlined_call_operand.vmem [shape: bf16[1,16,16], index: 6, kind: input, shape index: {}]   ;;  %s1256_s7 = inlined_call_operand.vmem [shape: f32[16,1], index: 7, kind: input, shape index: {}]   ;;  %s1257_s8 = inlined_call_operand.vmem [shape: bf16[2,16,8], index: 8, kind: output, shape index: {}]  }
   0x1   :  { %s1139_s29 = smov 0  }
   0x2 LB: > { %s30_s30 = sadd.s32 1, %s1079_s28  ;;  %p908_p0 = scmp.ge.s32.totalorder %s1083_s29, 1  ;;  %s1083_s29 = sphi %s1139_s29, %s18_s29   ;;  %s1079_s28 = sphi %s1137_s28, %s1259_s28   ;;  %s1075_s27 = sphi %s1135_s27, %s1258_s27  }
   0x3   : > { %p32_p1 = scmp.ge.s32.totalorder %s30_s30, 2  ;;  %p284_p2 = scmp.lt.s32.totalorder %s1083_s29, 3 }
   0x5   : > { %s1261_s30 = smov (%p32_p1, %s30_s30), 0  ;;  %p285_p3 = pnand %p908_p0, %p284_p2 }
   0x6   : > { %p324_p4 = scmp.lt.s32.totalorder (!%p285_p3), %s1075_s27, 1  ;;  %v1085_v0 = vmov (!%p285_p3), 0.0   ;;  %vm1086_vm0 = vmmov (!%p285_p3), 0   ;;  %vm366_vm1 = vcmask (!%p285_p3), 1043456   ;;  %v1087_v1 = vmov (!%p285_p3), 0   ;;  %v344_v2 = vld [vmem:[%s1252_s3 + $0x8] sm:$0xff] (!%p285_p3) }
   0x7   : > { %288 = sbr.rel (%p285_p3) target bundleno = 935 (0x3a7), region = 52  ;;  %960 = vmatprep.subr.bf16.mxu0 (!%p285_p3), %v1085_v0  ;;  %962 = vmatprep.mubr.msk.bf16.mxu0 (!%p285_p3), %vm1086_vm0, %v1085_v0  ;;  %v1054_v6 = vld [vmem:[%s1251_s2] sm:$0xff] (!%p285_p3)   ;;  %vm362_vm2 = vcmask (!%p285_p3), 64512   ;;  %s1088_s20 = smov (!%p285_p3), 127   ;;  %v1055_v12 = vld [vmem:[%s1251_s2 + $0x8] sm:$0xff] (!%p285_p3)   ;;  %v1056_v15 = vld [vmem:[%s1251_s2 + $0x10] sm:$0xff] (!%p285_p3)   ;;  %v538_v16 = vlaneseq (!%p285_p3) }
   0x8   : > { %978 = vmatprep.subr.bf16.mxu1 (!%p285_p3), %v1085_v0  ;;  %980 = vmatprep.mubr.msk.bf16.mxu1 (!%p285_p3), %vm1086_vm0, %v1085_v0  ;;  %v343_v9 = vld [vmem:[%s1252_s3] sm:$0xff] (!%p285_p3)  ;;  %vm566_vm9 = vcmask (!%p285_p3), 130048   ;;  %s1089_s15 = smov (!%p285_p3), 126   ;;  %v548_v36 = vld [vmem:[%s1254_s5 + $0x8] sm:$0xff] (!%p285_p3)  ;;  %v1059_v41 = vld [vmem:[%s1253_s4 + $0x10] sm:$0xff] (!%p285_p3)   ;;  %vm812_vm10 = vcmask (!%p285_p3), 60416  }
   0x9   : > { %1051 = vset.pattern.permute.xlu0 (!%p285_p3), %v1087_v1  ;;  %1052 = vset.pattern.permute.xlu1 (!%p285_p3), %v1087_v1  ;;  %v547_v10 = vld [vmem:[%s1254_s5] sm:$0xff] (!%p285_p3)  ;;  %v539_v17 = vand.u32 (!%p285_p3), 127, %v538_v16  ;;  %v734_v37 = vld [vmem:[%s1256_s7 + $0x8] sm:$0xff] (!%p285_p3) }
   0xa   : > { %352 = vperm.xlu1 (!%p285_p3), %1052, %v344_v2   ;;  %v733_v11 = vld [vmem:[%s1256_s7] sm:$0xff] (!%p285_p3)  ;;  %v1058_v39 = vld [vmem:[%s1253_s4 + $0x8] sm:$0xff] (!%p285_p3)  }
   0xb   : > { %v540_v18 = vadd.s32 (!%p285_p3), 4294967295, %v539_v17  ;;  %v1057_v35 = vld [vmem:[%s1253_s4] sm:$0xff] (!%p285_p3)  }
   0xc   : > { %v1060_v53 = vld [vmem:[%s1255_s6] sm:$0xff] (!%p285_p3)  }
   0xd   : > { %vm541_vm3 = vcmp.ge.s32.totalorder (!%p285_p3), %v540_v18, 0  ;;  %vm542_vm4 = vcmp.lt.s32.totalorder (!%p285_p3), %v540_v18, 8 }
   0xe   : > { %s1263_s27 = smov (!%p324_p4, %s1075_s27), 1  ;;  %vm543_vm6 = vmand %vm541_vm3, %vm542_vm4 }
   0xf   : > { %s909_s9 = sshll.u32 %s1263_s27, 2  ;;  %vm925_vm8 = vmpackc.low %vm543_vm6, %vm543_vm6  ;;  %s943_s26 = sshll.u32 %s1263_s27, 3 }
  0x10   : > { %s327_s14 = scalar_lea.vmem %s1249_s0, %s909_s9  ;;  %s331_s17 = scalar_lea.vmem %s1250_s1, %s909_s9 }
  0x11   : > { %v341_v3 = vld [vmem:[%s327_s14] sm:$0xf]  ;;  %s339_s11 = scalar_lea.vmem %s1257_s8, %s943_s26 }
  0x12   : > { %v922_v4 = vcombine.low %v341_v3, %v341_v3  ;;  %v368_v5 = vsel %vm366_vm1, %v341_v3, 0  ;;  %v342_v7 = vld [vmem:[%s331_s17] sm:$0xf] }
  0x13   : > { %961 = vmatpush3.bf16.msra.mxu0 %v368_v5  ;;  %v425_v8 = vsel %vm366_vm1, %v342_v7, 0 }
  0x14   : > { %481 = vrot.lane.b32.xlu0 %v922_v4, %s1088_s20  ;;  %966 = vmatprep.subr.bf16.mxu0 %v1085_v0 }
  0x16   : > { %963 = vmatmul.mubr.msk.bf16.vlgmr.msra.gmra.mrb[0].mxu0 %vm362_vm2, %v1054_v6 }
  0x17   : > { %967 = vmatpush3.bf16.msra.mxu0 %v425_v8  ;;  %968 = vmatprep.mubr.msk.bf16.mxu0 %vm1086_vm0, %v1085_v0 }
  0x18   : > { %972 = vmatprep.subr.bf16.mxu0 %v1085_v0  ;;  %347 = vperm.xlu0 %1051, %v343_v9  }
  0x1c   : > { %551 = vperm.xlu0 %1051, %v547_v10  }
  0x20   : > { %737 = vperm.xlu0 %1051, %v733_v11  }
  0x22   : > { %969 = vmatmul.mubr.msk.bf16.vlgmr.msra.gmra.mrb[0].mxu0 %vm362_vm2, %v1055_v12 }
  0x23   : > { %974 = vmatprep.mubr.msk.bf16.mxu0 %vm1086_vm0, %v1085_v0 }
  0x86   : > { %v482_v13 = vpop.permute.xlu0 %481 }
  0x87   : > { %v487_v14 = vsel %vm366_vm1, %v482_v13, 0 }
  0x88   : > { %973 = vmatpush3.bf16.msra.mxu0 %v487_v14 }
  0x89   : > { %996 = vmatprep.subr.bf16.mxu0 %v1085_v0  ;;  %v353_v21 = vpop.permute.xlu1 %352 }
  0x8b   : > { %975 = vmatmul.mubr.msk.bf16.vlgmr.msra.gmra.mrb[0].mxu0 %vm362_vm2, %v1056_v15 }
  0x8c   : > { %998 = vmatprep.mubr.msk.bf16.mxu0 %vm1086_vm0, %v1085_v0 }
  0x97   : > { %v348_v19 = vpop.permute.xlu0 %347 }
  0x9b   : > { %v552_v42 = vpop.permute.xlu0 %551 }
  0x9f   : > { %v738_v54 = vpop.permute.xlu0 %737 }
 0x15e   : > { %v523_v20 = vpop.f32.mrb[0].mxu0 }
 0x15f   : > { %v1002_v22 = vadd.f32 %v523_v20, %v348_v19  ;;  %v976_v23 = vpop.f32.mrb[1].mxu0 }
 0x160   : > { %v526_v24 = vpop.f32.mrb[2].mxu0 }
 0x161   : > { %v534_v25 = vmul.f32 0.2, %v1002_v22  ;;  %v1003_v26 = vadd.f32 %v526_v24, %v353_v21  ;;  %v977_v27 = vpop.f32.mrb[3].mxu0  ;;  %vm532_vm5 = vcmp.ge.f32.partialorder %v1002_v22, 0.0 }
 0x163   : > { %vm533_vm7 = vcmp.ge.f32.partialorder %v1003_v26, 0.0  ;;  %v535_v28 = vmul.f32 0.2, %v1003_v26  ;;  %v536_v29 = vsel %vm532_vm5, %v1002_v22, %v534_v25 }
 0x164   : > { %v544_v30 = vsel %vm543_vm6, %v536_v29, 0.0 }
 0x165   : > { %796 = vrot.lane.b32.xlu0 %v544_v30, %s1088_s20  ;;  %v537_v31 = vsel %vm533_vm7, %v1003_v26, %v535_v28 }
 0x166   : > { %v545_v32 = vsel %vm543_vm6, %v537_v31, 0.0  ;;  %v926_v33 = vpack.c.bf16 %v537_v31, %v536_v29 }
 0x167   : > { %v546_v34 = vpack.c.bf16 %v545_v32, %v544_v30 }
 0x168   : > { %979 = vmatpush3.bf16.msk.msra.mxu1 %vm925_vm8, %v926_v33 }
 0x169   : > { %622 = vrot.lane.b32.xlu1 %v546_v34, %s1088_s20  ;;  %984 = vmatprep.subr.bf16.mxu1 %v1085_v0 }
 0x16b   : > { %981 = vmatmul.mubr.msk.bf16.vlgmr.msra.gmra.mrb[0].mxu1 %vm566_vm9, %v1057_v35 }
 0x16c   : > { %986 = vmatprep.mubr.msk.bf16.mxu1 %vm1086_vm0, %v1085_v0 }
 0x16d   : > { %679 = vrot.lane.b32.xlu1 %v546_v34, %s1089_s15 }
 0x171   : > { %556 = vperm.xlu1 %1052, %v548_v36  }
 0x175   : > { %742 = vperm.xlu1 %1052, %v734_v37  }
 0x179   : > { %798 = vrot.lane.b32.xlu1 %v545_v32, %s1088_s20 }
 0x1d7   : > { %v797_v59 = vpop.permute.xlu0 %796 }
 0x1db   : > { %v623_v38 = vpop.permute.xlu1 %622 }
 0x1dc   : > { %985 = vmatpush3.bf16.msra.mxu1 %v623_v38 }
 0x1dd   : > { %990 = vmatprep.subr.bf16.mxu1 %v1085_v0 }
 0x1df   : > { %987 = vmatmul.mubr.msk.bf16.vlgmr.msra.gmra.mrb[0].mxu1 %vm566_vm9, %v1058_v39  ;;  %v680_v40 = vpop.permute.xlu1 %679 }
 0x1e0   : > { %991 = vmatpush3.bf16.msra.mxu1 %v680_v40  ;;  %992 = vmatprep.mubr.msk.bf16.mxu1 %vm1086_vm0, %v1085_v0 }
 0x1eb   : > { %993 = vmatmul.mubr.msk.bf16.vlgmr.msra.gmra.mrb[0].mxu1 %vm566_vm9, %v1059_v41 }
 0x1f0   : > { %v557_v46 = vpop.permute.xlu1 %556 }
 0x1f4   : > { %v743_v55 = vpop.permute.xlu1 %742 }
 0x1f8   : > { %v799_v0 = vpop.permute.xlu1 %798 }
 0x2be   : > { %v719_v43 = vpop.f32.mrb[0].mxu1 }
 0x2bf   : > { %v1004_v44 = vadd.f32 %v719_v43, %v552_v42  ;;  %v994_v45 = vpop.f32.mrb[1].mxu1 }
 0x2c0   : > { %v722_v47 = vpop.f32.mrb[2].mxu1 }
 0x2c1   : > { %v1005_v48 = vadd.f32 %v722_v47, %v557_v46  ;;  %v995_v49 = vpop.f32.mrb[3].mxu1  ;;  %v728_v50 = vmax.f32 %v1004_v44, 0.0 }
 0x2c3   : > { %v729_v51 = vmax.f32 %v1005_v48, 0.0 }
 0x2c5   : > { %v730_v52 = vpack.c.bf16 %v729_v51, %v728_v50 }
 0x2c7   : > { %997 = vmatpush3.bf16.msra.mxu0 %v730_v52 }
 0x2ca   : > { %999 = vmatmul.mubr.msk.bf16.vlgmr.msra.gmra.mrb[4].mxu0 %vm566_vm9, %v1060_v53 }
 0x39d   : > { %v787_v56 = vpop.f32.mrb[4].mxu0 }
 0x39e   : > { %v788_v57 = vadd.f32 %v787_v56, %v738_v54  ;;  %v1000_v58 = vpop.f32.mrb[5].mxu0 }
 0x39f   : > { %v790_v60 = vpop.f32.mrb[6].mxu0 }
 0x3a0   : > { %v802_v61 = vadd.f32 %v797_v59, %v788_v57  ;;  %v791_v62 = vadd.f32 %v790_v60, %v743_v55  ;;  %v1001_v63 = vpop.f32.mrb[7].mxu0 }
 0x3a2   : > { %v944_v1 = vpack.c.bf16 %v802_v61, %v802_v61  ;;  %v803_v2 = vadd.f32 %v799_v0, %v791_v62 }
 0x3a4   : > { %813 = vst.msk [vmem:[%s339_s11] sm:$0xf] %vm812_vm10, %v944_v1  ;;  %v945_v3 = vpack.c.bf16 %v803_v2, %v803_v2 }
 0x3a6   : > { %814 = vst.msk [vmem:[%s339_s11 + $0x4] sm:$0xf] %vm812_vm10, %v945_v3 }
 0x3a7 PF: > { %s18_s29 = sadd.s32 1, %s1083_s29   ;;  %s1258_s27 = smov %s1079_s28 }
 0x3a8   : > { %p15_p5 = scmp.ge.s32.totalorder %s18_s29, 4   ;;  %s1259_s28 = smov %s1261_s30 }
 0x3aa   :  { %17 = sbr.rel (!%p15_p5) target bundleno = 2 (0x2), region = 89 }

// kernel: unet_forward.7
= control target key start
LH: loop header
LB: loop body
LE: loop exit
PB: predicated region body
PF: predicated region fallthrough
CT: control target
= control target key end

     0   :  { %s1417_s27 = smov 0   ;;  %s1419_s28 = smov 0   ;;  %s1556_s0 = inlined_call_operand.vmem [shape: bf16[2,16,7], index: 0, kind: input, shape index: {}]   ;;  %s1557_s1 = inlined_call_operand.vmem [shape: bf16[2,16,6], index: 1, kind: input, shape index: {}]   ;;  %s1558_s2 = inlined_call_operand.vmem [shape: bf16[3,32,16], index: 2, kind: input, shape index: {}]   ;;  %s1559_s3 = inlined_call_operand.vmem [shape: f32[32,1], index: 3, kind: input, shape index: {}]   ;;  %s1560_s4 = inlined_call_operand.vmem [shape: bf16[3,32,32], index: 4, kind: input, shape index: {}]   ;;  %s1561_s5 = inlined_call_operand.vmem [shape: f32[32,1], index: 5, kind: input, shape index: {}]   ;;  %s1562_s6 = inlined_call_operand.vmem [shape: bf16[1,32,32], index: 6, kind: input, shape index: {}]   ;;  %s1563_s7 = inlined_call_operand.vmem [shape: f32[32,1], index: 7, kind: input, shape index: {}]   ;;  %s1564_s8 = inlined_call_operand.vmem [shape: bf16[2,32,4], index: 8, kind: output, shape index: {}]  }
   0x1   :  { %s1421_s29 = smov 0  }
   0x2 LB: > { %s30_s30 = sadd.s32 1, %s1363_s28  ;;  %p1129_p0 = scmp.ge.s32.totalorder %s1367_s29, 1  ;;  %s1367_s29 = sphi %s1421_s29, %s18_s29   ;;  %s1363_s28 = sphi %s1419_s28, %s1566_s28   ;;  %s1359_s27 = sphi %s1417_s27, %s1565_s27  }
   0x3   : > { %p32_p1 = scmp.ge.s32.totalorder %s30_s30, 2  ;;  %p286_p2 = scmp.lt.s32.totalorder %s1367_s29, 3 }
   0x5   : > { %s1568_s30 = smov (%p32_p1, %s30_s30), 0  ;;  %p287_p3 = pnand %p1129_p0, %p286_p2 }
   0x6   : > { %p328_p4 = scmp.lt.s32.totalorder (!%p287_p3), %s1359_s27, 1  ;;  %v1330_v0 = vld [vmem:[%s1558_s2] sm:$0xff] (!%p287_p3)   ;;  %vm395_vm0 = vcmask (!%p287_p3), 130048   ;;  %v1369_v1 = vmov (!%p287_p3), 0   ;;  %s1370_s18 = smov (!%p287_p3), 127   ;;  %v1331_v4 = vld [vmem:[%s1558_s2 + $0x8] sm:$0xff] (!%p287_p3)   ;;  %v624_v16 = vlaneseq (!%p287_p3) }
   0x7   : > { %290 = sbr.rel (%p287_p3) target bundleno = 946 (0x3b2), region = 52  ;;  %1228 = vmatprep.mubr.msk.bf16.mxu0 (!%p287_p3), %vm395_vm0, %v1330_v0  ;;  %1328 = vset.pattern.permute.xlu1 (!%p287_p3), %v1369_v1  ;;  %v1333_v5 = vld [vmem:[%s1558_s2 + $0x10] sm:$0xff] (!%p287_p3)   ;;  %v352_v6 = vld [vmem:[%s1559_s3 + $0x8] sm:$0xff] (!%p287_p3)  ;;  %v351_v8 = vld [vmem:[%s1559_s3] sm:$0xff] (!%p287_p3)  ;;  %vm674_vm1 = vcmask (!%p287_p3), 261120   ;;  %s1371_s22 = smov (!%p287_p3), 126  }
   0x8   : > { %1327 = vset.pattern.permute.xlu0 (!%p287_p3), %v1369_v1  ;;  %362 = vperm.xlu1 (!%p287_p3), %1328, %v352_v6   ;;  %v353_v7 = vld [vmem:[%s1559_s3 + $0x10] sm:$0xff] (!%p287_p3)  ;;  %v354_v9 = vld [vmem:[%s1559_s3 + $0x18] sm:$0xff] (!%p287_p3)  ;;  %v1335_v11 = vld [vmem:[%s1558_s2 + $0x20] sm:$0xff] (!%p287_p3)   ;;  %v625_v17 = vand.u32 (!%p287_p3), 127, %v624_v16  ;;  %vm1031_vm10 = vcmask (!%p287_p3), 27648  }
   0x9   : > { %v1334_v10 = vld [vmem:[%s1558_s2 + $0x18] sm:$0xff] (!%p287_p3)   ;;  %v1336_v13 = vld [vmem:[%s1558_s2 + $0x28] sm:$0xff] (!%p287_p3)   ;;  %v1337_v14 = vld [vmem:[%s1560_s4] sm:$0xff] (!%p287_p3)  }
   0xa   : > { %1248 = vmatprep.mubr.msk.bf16.mxu1 (!%p287_p3), %vm674_vm1, %v1337_v14  ;;  %v626_v19 = vadd.s32 (!%p287_p3), 4294967295, %v625_v17  ;;  %v1338_v46 = vld [vmem:[%s1560_s4 + $0x8] sm:$0xff] (!%p287_p3)   ;;  %v1339_v48 = vld [vmem:[%s1560_s4 + $0x10] sm:$0xff] (!%p287_p3)   ;;  %v636_v49 = vld [vmem:[%s1561_s5] sm:$0xff] (!%p287_p3) }
   0xb   : > { %v637_v47 = vld [vmem:[%s1561_s5 + $0x8] sm:$0xff] (!%p287_p3)  ;;  %v639_v50 = vld [vmem:[%s1561_s5 + $0x18] sm:$0xff] (!%p287_p3)  ;;  %v638_v51 = vld [vmem:[%s1561_s5 + $0x10] sm:$0xff] (!%p287_p3) }
   0xc   : > { %367 = vperm.xlu1 (!%p287_p3), %1328, %v353_v7   ;;  %vm627_vm2 = vcmp.ge.s32.totalorder (!%p287_p3), %v626_v19, 0  ;;  %vm628_vm3 = vcmp.lt.s32.totalorder (!%p287_p3), %v626_v19, 4  ;;  %v907_v52 = vld [vmem:[%s1563_s7 + $0x8] sm:$0xff] (!%p287_p3)  ;;  %v906_v53 = vld [vmem:[%s1563_s7] sm:$0xff] (!%p287_p3)  ;;  %v909_v54 = vld [vmem:[%s1563_s7 + $0x18] sm:$0xff] (!%p287_p3) }
   0xd   : > { %vm629_vm7 = vmand (!%p287_p3), %vm627_vm2, %vm628_vm3  ;;  %v908_v55 = vld [vmem:[%s1563_s7 + $0x10] sm:$0xff] (!%p287_p3)  ;;  %v1340_v58 = vld [vmem:[%s1560_s4 + $0x18] sm:$0xff] (!%p287_p3)  }
   0xe   : > { %s1570_s27 = smov (!%p328_p4, %s1359_s27), 1  ;;  %vm1160_vm9 = vmpackc.low %vm629_vm7, %vm629_vm7  ;;  %v1341_v60 = vld [vmem:[%s1560_s4 + $0x20] sm:$0xff]   ;;  %v1342_v62 = vld [vmem:[%s1560_s4 + $0x28] sm:$0xff]  }
   0xf   : > { %s1194_s11 = sshll.u32 %s1570_s27, 3  ;;  %v1343_v63 = vld [vmem:[%s1562_s6] sm:$0xff]  }
  0x10   : > { %s332_s14 = scalar_lea.vmem %s1556_s0, %s1194_s11  ;;  %s337_s17 = scalar_lea.vmem %s1557_s1, %s1194_s11  ;;  %372 = vperm.xlu1 %1328, %v354_v9  }
  0x11   : > { %v1329_v2 = vld [vmem:[%s332_s14] sm:$0xff]  }
  0x12   : > { %v1332_v3 = vld [vmem:[%s337_s17] sm:$0xff]   ;;  %550 = vrot.lane.b32.xlu0 %v1329_v2, %s1370_s18  ;;  %1226 = vmatprep.subr.bf16.mxu0 %v1329_v2  ;;  %s1196_s17 = sshll.u32 %s1570_s27, 4 }
  0x13   : > { %1227 = vmatpush3.bf16.msra.mxu0 %v1329_v2  ;;  %s345_s21 = scalar_lea.vmem %s1564_s8, %s1196_s17 }
  0x14   : > { %1232 = vmatprep.subr.bf16.mxu0 %v1332_v3 }
  0x16   : > { %1229 = vmatmul.mubr.msk.bf16.vlgmr.msra.gmra.mrb[0].mxu0 %vm395_vm0, %v1331_v4  ;;  %357 = vperm.xlu0 %1327, %v351_v8  }
  0x17   : > { %1233 = vmatpush3.bf16.msra.mxu0 %v1332_v3  ;;  %1234 = vmatprep.mubr.msk.bf16.mxu0 %vm395_vm0, %v1333_v5 }
  0x22   : > { %1235 = vmatmul.mubr.msk.bf16.vlgmr.msra.gmra.mrb[0].mxu0 %vm395_vm0, %v1334_v10 }
  0x23   : > { %1240 = vmatprep.mubr.msk.bf16.mxu0 %vm395_vm0, %v1335_v11 }
  0x84   : > { %v551_v12 = vpop.permute.xlu0 %550 }
  0x85   : > { %1238 = vmatprep.subr.bf16.mxu0 %v551_v12 }
  0x86   : > { %1239 = vmatpush3.bf16.msra.mxu0 %v551_v12 }
  0x87   : > { %v363_v15 = vpop.permute.xlu1 %362 }
  0x89   : > { %1241 = vmatmul.mubr.msk.bf16.vlgmr.msra.gmra.mrb[0].mxu0 %vm395_vm0, %v1336_v13 }
  0x8a   : > { %1272 = vmatprep.mubr.msk.bf16.mxu0 %vm674_vm1, %v1343_v63 }
  0x8b   : > { %v368_v18 = vpop.permute.xlu1 %367 }
  0x8f   : > { %v373_v25 = vpop.permute.xlu1 %372 }
  0x95   : > { %v358_v20 = vpop.permute.xlu0 %357 }
 0x15c   : > { %v1242_v21 = vpop.f32.mrb[0].mxu0 }
 0x15d   : > { %v1276_v22 = vadd.f32 %v1242_v21, %v368_v18  ;;  %v593_v23 = vpop.f32.mrb[1].mxu0  ;;  %v1344_v18 = vld [vmem:[%s1562_s6 + $0x8] sm:$0xff]  }
 0x15e   : > { %v1277_v24 = vadd.f32 %v593_v23, %v358_v20  ;;  %v1243_v26 = vpop.f32.mrb[2].mxu0 }
 0x15f   : > { %vm614_vm4 = vcmp.ge.f32.partialorder %v1276_v22, 0.0  ;;  %v618_v27 = vmul.f32 0.2, %v1276_v22  ;;  %v1278_v28 = vadd.f32 %v1243_v26, %v373_v25  ;;  %v596_v29 = vpop.f32.mrb[3].mxu0 }
 0x160   : > { %v616_v30 = vmul.f32 0.2, %v1277_v24  ;;  %v1279_v31 = vadd.f32 %v596_v29, %v363_v15  ;;  %vm612_vm5 = vcmp.ge.f32.partialorder %v1277_v24, 0.0 }
 0x161   : > { %v622_v32 = vsel %vm614_vm4, %v1276_v22, %v618_v27  ;;  %vm615_vm6 = vcmp.ge.f32.partialorder %v1278_v28, 0.0  ;;  %v619_v33 = vmul.f32 0.2, %v1278_v28 }
 0x162   : > { %v617_v34 = vmul.f32 0.2, %v1279_v31  ;;  %vm613_vm8 = vcmp.ge.f32.partialorder %v1279_v31, 0.0  ;;  %v620_v35 = vsel %vm612_vm5, %v1277_v24, %v616_v30  ;;  %v632_v38 = vsel %vm629_vm7, %v622_v32, 0.0 }
 0x163   : > { %v623_v36 = vsel %vm615_vm6, %v1278_v28, %v619_v33  ;;  %v630_v42 = vsel %vm629_vm7, %v620_v35, 0.0 }
 0x164   : > { %v1164_v37 = vpack.c.bf16 %v623_v36, %v622_v32  ;;  %v633_v39 = vsel %vm629_vm7, %v623_v36, 0.0  ;;  %v621_v40 = vsel %vm613_vm8, %v1279_v31, %v617_v34 }
 0x165   : > { %v635_v41 = vpack.c.bf16 %v633_v39, %v632_v38  ;;  %v631_v43 = vsel %vm629_vm7, %v621_v40, 0.0  ;;  %v1161_v44 = vpack.c.bf16 %v621_v40, %v620_v35 }
 0x166   : > { %v634_v45 = vpack.c.bf16 %v631_v43, %v630_v42 }
 0x167   : > { %753 = vrot.lane.b32.xlu1 %v635_v41, %s1370_s18  ;;  %1244 = vmatprep.subr.msk.bf16.mxu1 %vm1160_vm9, %v1161_v44 }
 0x168   : > { %1245 = vmatpush3.bf16.msk.msra.mxu1 %vm1160_vm9, %v1161_v44  ;;  %751 = vrot.lane.b32.xlu0 %v634_v45, %s1370_s18 }
 0x169   : > { %1246 = vmatprep.subr.msk.bf16.mxu1 %vm1160_vm9, %v1164_v37 }
 0x16b   : > { %833 = vrot.lane.b32.xlu1 %v635_v41, %s1371_s22 }
 0x16c   : > { %1247 = vmatpush3.bf16.msk.msra.mxu1 %vm1160_vm9, %v1164_v37  ;;  %831 = vrot.lane.b32.xlu0 %v634_v45, %s1371_s22 }
 0x16f   : > { %647 = vperm.xlu1 %1328, %v637_v47   ;;  %1249 = vmatmul.mubr.msk.bf16.vlgmr.msra.gmra.mrb[0].mxu1 %vm674_vm1, %v1338_v46 }
 0x170   : > { %642 = vperm.xlu0 %1327, %v636_v49   ;;  %1256 = vmatprep.mubr.msk.bf16.mxu1 %vm674_vm1, %v1339_v48 }
 0x173   : > { %657 = vperm.xlu1 %1328, %v639_v50  }
 0x174   : > { %652 = vperm.xlu0 %1327, %v638_v51  }
 0x177   : > { %917 = vperm.xlu1 %1328, %v907_v52  }
 0x178   : > { %912 = vperm.xlu0 %1327, %v906_v53  }
 0x17b   : > { %927 = vperm.xlu1 %1328, %v909_v54  }
 0x17c   : > { %922 = vperm.xlu0 %1327, %v908_v55  }
 0x17f   : > { %1001 = vrot.lane.b32.xlu1 %v631_v43, %s1370_s18 }
 0x180   : > { %999 = vrot.lane.b32.xlu0 %v630_v42, %s1370_s18 }
 0x183   : > { %1005 = vrot.lane.b32.xlu1 %v633_v39, %s1370_s18 }
 0x184   : > { %1003 = vrot.lane.b32.xlu0 %v632_v38, %s1370_s18 }
 0x1d9   : > { %v754_v57 = vpop.permute.xlu1 %753 }
 0x1da   : > { %v752_v56 = vpop.permute.xlu0 %751 }
 0x1db   : > { %1252 = vmatprep.subr.bf16.mxu1 %v752_v56 }
 0x1dc   : > { %1253 = vmatpush3.bf16.msra.mxu1 %v752_v56 }
 0x1dd   : > { %1254 = vmatprep.subr.bf16.mxu1 %v754_v57  ;;  %v834_v61 = vpop.permute.xlu1 %833 }
 0x1de   : > { %v832_v59 = vpop.permute.xlu0 %831 }
 0x1e0   : > { %1255 = vmatpush3.bf16.msra.mxu1 %v754_v57 }
 0x1e1   : > { %1260 = vmatprep.subr.bf16.mxu1 %v832_v59 }
 0x1e3   : > { %1257 = vmatmul.mubr.msk.bf16.vlgmr.msra.gmra.mrb[0].mxu1 %vm674_vm1, %v1340_v58 }
 0x1e4   : > { %1261 = vmatpush3.bf16.msra.mxu1 %v832_v59  ;;  %1264 = vmatprep.mubr.msk.bf16.mxu1 %vm674_vm1, %v1341_v60 }
 0x1e5   : > { %1262 = vmatprep.subr.bf16.mxu1 %v834_v61 }
 0x1e8   : > { %1263 = vmatpush3.bf16.msra.mxu1 %v834_v61 }
 0x1ee   : > { %v648_v1 = vpop.permute.xlu1 %647 }
 0x1ef   : > { %1265 = vmatmul.mubr.msk.bf16.vlgmr.msra.gmra.mrb[0].mxu1 %vm674_vm1, %v1342_v62  ;;  %v643_v0 = vpop.permute.xlu0 %642 }
 0x1f2   : > { %v658_v6 = vpop.permute.xlu1 %657 }
 0x1f3   : > { %v653_v2 = vpop.permute.xlu0 %652 }
 0x1f6   : > { %v918_v20 = vpop.permute.xlu1 %917 }
 0x1f7   : > { %v913_v19 = vpop.permute.xlu0 %912 }
 0x1fa   : > { %v928_v22 = vpop.permute.xlu1 %927 }
 0x1fb   : > { %v923_v21 = vpop.permute.xlu0 %922 }
 0x1fe   : > { %v1002_v24 = vpop.permute.xlu1 %1001 }
 0x1ff   : > { %v1000_v23 = vpop.permute.xlu0 %999 }
 0x202   : > { %v1006_v34 = vpop.permute.xlu1 %1005 }
 0x203   : > { %v1004_v28 = vpop.permute.xlu0 %1003 }
 0x2c2   : > { %v1266_v3 = vpop.f32.mrb[0].mxu1 }
 0x2c3   : > { %v1280_v4 = vadd.f32 %v1266_v3, %v653_v2  ;;  %v877_v5 = vpop.f32.mrb[1].mxu1 }
 0x2c4   : > { %v1281_v7 = vadd.f32 %v877_v5, %v643_v0  ;;  %v1267_v8 = vpop.f32.mrb[2].mxu1 }
 0x2c5   : > { %v1282_v9 = vadd.f32 %v1267_v8, %v658_v6  ;;  %v880_v10 = vpop.f32.mrb[3].mxu1  ;;  %v898_v12 = vmax.f32 %v1280_v4, 0.0 }
 0x2c6   : > { %v1283_v11 = vadd.f32 %v880_v10, %v648_v1  ;;  %v896_v14 = vmax.f32 %v1281_v7, 0.0 }
 0x2c7   : > { %v899_v13 = vmax.f32 %v1282_v9, 0.0 }
 0x2c8   : > { %v897_v15 = vmax.f32 %v1283_v11, 0.0 }
 0x2c9   : > { %v901_v16 = vpack.c.bf16 %v899_v13, %v898_v12 }
 0x2ca   : > { %v900_v17 = vpack.c.bf16 %v897_v15, %v896_v14 }
 0x2cc   : > { %1268 = vmatprep.subr.bf16.mxu0 %v900_v17 }
 0x2cd   : > { %1269 = vmatpush3.bf16.msra.mxu0 %v900_v17 }
 0x2ce   : > { %1270 = vmatprep.subr.bf16.mxu0 %v901_v16 }
 0x2d1   : > { %1271 = vmatpush3.bf16.msra.mxu0 %v901_v16 }
 0x2d4   : > { %1273 = vmatmul.mubr.msk.bf16.vlgmr.msra.gmra.mrb[4].mxu0 %vm674_vm1, %v1344_v18 }
 0x3a7   : > { %v1274_v25 = vpop.f32.mrb[4].mxu0 }
 0x3a8   : > { %v989_v26 = vadd.f32 %v1274_v25, %v923_v21  ;;  %v980_v27 = vpop.f32.mrb[5].mxu0 }
 0x3a9   : > { %v981_v29 = vadd.f32 %v980_v27, %v913_v19  ;;  %v1275_v30 = vpop.f32.mrb[6].mxu0 }
 0x3aa   : > { %v1013_v31 = vadd.f32 %v1004_v28, %v989_v26  ;;  %v992_v32 = vadd.f32 %v1275_v30, %v928_v22  ;;  %v983_v33 = vpop.f32.mrb[7].mxu0 }
 0x3ab   : > { %v1011_v35 = vadd.f32 %v1000_v23, %v981_v29  ;;  %v984_v36 = vadd.f32 %v983_v33, %v918_v20 }
 0x3ac   : > { %v1199_v37 = vpack.c.bf16 %v1013_v31, %v1013_v31  ;;  %v1014_v38 = vadd.f32 %v1006_v34, %v992_v32 }
 0x3ad   : > { %v1197_v39 = vpack.c.bf16 %v1011_v35, %v1011_v35  ;;  %v1012_v40 = vadd.f32 %v1002_v24, %v984_v36 }
 0x3ae   : > { %1034 = vst.msk [vmem:[%s345_s21 + $0x8] sm:$0xf] %vm1031_vm10, %v1199_v37  ;;  %v1200_v41 = vpack.c.bf16 %v1014_v38, %v1014_v38 }
 0x3af   : > { %1032 = vst.msk [vmem:[%s345_s21] sm:$0xf] %vm1031_vm10, %v1197_v39  ;;  %v1198_v42 = vpack.c.bf16 %v1012_v40, %v1012_v40 }
 0x3b0   : > { %1035 = vst.msk [vmem:[%s345_s21 + $0xc] sm:$0xf] %vm1031_vm10, %v1200_v41 }
 0x3b1   : > { %1033 = vst.msk [vmem:[%s345_s21 + $0x4] sm:$0xf] %vm1031_vm10, %v1198_v42 }
 0x3b2 PF: > { %s18_s29 = sadd.s32 1, %s1367_s29   ;;  %s1565_s27 = smov %s1363_s28 }
 0x3b3   : > { %p15_p5 = scmp.ge.s32.totalorder %s18_s29, 4   ;;  %s1566_s28 = smov %s1568_s30 }
 0x3b5   :  { %17 = sbr.rel (!%p15_p5) target bundleno = 2 (0x2), region = 89 }

// kernel: unet_forward.8
= control target key start
LH: loop header
LB: loop body
LE: loop exit
PB: predicated region body
PF: predicated region fallthrough
CT: control target
= control target key end

     0   :  { %s1177_s27 = smov 0   ;;  %s1179_s28 = smov 0   ;;  %s1299_s0 = inlined_call_operand.vmem [shape: bf16[2,32,12], index: 0, kind: input, shape index: {}]   ;;  %s1300_s1 = inlined_call_operand.vmem [shape: bf16[3,16,32], index: 1, kind: input, shape index: {}]   ;;  %s1301_s2 = inlined_call_operand.vmem [shape: f32[16,1], index: 2, kind: input, shape index: {}]   ;;  %s1302_s3 = inlined_call_operand.vmem [shape: bf16[2,16,10], index: 3, kind: input, shape index: {}]   ;;  %s1303_s4 = inlined_call_operand.vmem [shape: bf16[3,16,16], index: 4, kind: input, shape index: {}]   ;;  %s1304_s5 = inlined_call_operand.vmem [shape: f32[16,1], index: 5, kind: input, shape index: {}]   ;;  %s1305_s6 = inlined_call_operand.vmem [shape: bf16[1,16,16], index: 6, kind: input, shape index: {}]   ;;  %s1306_s7 = inlined_call_operand.vmem [shape: f32[16,1], index: 7, kind: input, shape index: {}]   ;;  %s1307_s8 = inlined_call_operand.vmem [shape: bf16[2,16,8], index: 8, kind: output, shape index: {}]  }
   0x1   :  { %s1181_s29 = smov 0  }
   0x2 LB: > { %s30_s30 = sadd.s32 1, %s1121_s28  ;;  %p931_p0 = scmp.ge.s32.totalorder %s1125_s29, 1  ;;  %s1125_s29 = sphi %s1181_s29, %s18_s29   ;;  %s1121_s28 = sphi %s1179_s28, %s1309_s28   ;;  %s1117_s27 = sphi %s1177_s27, %s1308_s27  }
   0x3   : > { %p32_p1 = scmp.ge.s32.totalorder %s30_s30, 2  ;;  %p286_p2 = scmp.lt.s32.totalorder %s1125_s29, 3 }
   0x5   : > { %s1311_s30 = smov (%p32_p1, %s30_s30), 0  ;;  %p287_p3 = pnand %p931_p0, %p286_p2 }
   0x6   : > { %p328_p4 = scmp.lt.s32.totalorder (!%p287_p3), %s1117_s27, 1  ;;  %v1127_v0 = vmov (!%p287_p3), 0.0   ;;  %vm1128_vm0 = vmmov (!%p287_p3), 0   ;;  %s1129_s13 = smov (!%p287_p3), 127   ;;  %v1096_v3 = vld [vmem:[%s1300_s1] sm:$0xff] (!%p287_p3)   ;;  %vm384_vm1 = vcmask (!%p287_p3), 261120   ;;  %v561_v13 = vlaneseq (!%p287_p3) }
   0x7   : > { %290 = sbr.rel (%p287_p3) target bundleno = 950 (0x3b6), region = 52  ;;  %995 = vmatprep.subr.bf16.mxu0 (!%p287_p3), %v1127_v0  ;;  %999 = vmatprep.mubr.msk.bf16.mxu0 (!%p287_p3), %vm1128_vm0, %v1127_v0  ;;  %s1130_s14 = smov (!%p287_p3), 126   ;;  %v353_v4 = vld [vmem:[%s1301_s2] sm:$0xff] (!%p287_p3)  ;;  %v354_v5 = vld [vmem:[%s1301_s2 + $0x8] sm:$0xff] (!%p287_p3)  ;;  %v1131_v6 = vmov (!%p287_p3), 0   ;;  %v1098_v12 = vld [vmem:[%s1300_s1 + $0x10] sm:$0xff] (!%p287_p3)  }
   0x8   : > { %1019 = vmatprep.subr.bf16.mxu1 (!%p287_p3), %v1127_v0  ;;  %1021 = vmatprep.mubr.msk.bf16.mxu1 (!%p287_p3), %vm1128_vm0, %v1127_v0  ;;  %v1097_v9 = vld [vmem:[%s1300_s1 + $0x8] sm:$0xff] (!%p287_p3)   ;;  %v562_v14 = vand.u32 (!%p287_p3), 127, %v561_v13  ;;  %v1099_v37 = vld [vmem:[%s1303_s4] sm:$0xff] (!%p287_p3)   ;;  %vm589_vm8 = vcmask (!%p287_p3), 130048   ;;  %v1101_v45 = vld [vmem:[%s1303_s4 + $0x10] sm:$0xff] (!%p287_p3)   ;;  %vm835_vm9 = vcmask (!%p287_p3), 60416  }
   0x9   : > { %1092 = vset.pattern.permute.xlu0 (!%p287_p3), %v1131_v6  ;;  %1093 = vset.pattern.permute.xlu1 (!%p287_p3), %v1131_v6  ;;  %v571_v38 = vld [vmem:[%s1304_s5 + $0x8] sm:$0xff] (!%p287_p3)  ;;  %v570_v39 = vld [vmem:[%s1304_s5] sm:$0xff] (!%p287_p3) }
   0xa   : > { %v563_v19 = vadd.s32 (!%p287_p3), 4294967295, %v562_v14  ;;  %v757_v40 = vld [vmem:[%s1306_s7 + $0x8] sm:$0xff] (!%p287_p3)  ;;  %v756_v41 = vld [vmem:[%s1306_s7] sm:$0xff] (!%p287_p3) }
   0xb   : > { %v1100_v43 = vld [vmem:[%s1303_s4 + $0x8] sm:$0xff] (!%p287_p3)   ;;  %v1102_v57 = vld [vmem:[%s1305_s6] sm:$0xff] (!%p287_p3)  }
   0xc   : > { %vm564_vm3 = vcmp.ge.s32.totalorder (!%p287_p3), %v563_v19, 0  ;;  %vm565_vm4 = vcmp.lt.s32.totalorder (!%p287_p3), %v563_v19, 8 }
   0xd   : > { %vm566_vm6 = vmand (!%p287_p3), %vm564_vm3, %vm565_vm4 }
   0xe   : > { %s1313_s27 = smov (!%p328_p4, %s1117_s27), 1  ;;  %vm951_vm7 = vmpackc.low %vm566_vm6, %vm566_vm6 }
   0xf   : > { %s969_s9 = sshll.u32 %s1313_s27, 4  ;;  %s970_s25 = sshll.u32 %s1313_s27, 3 }
  0x10   : > { %s332_s12 = scalar_lea.vmem %s1299_s0, %s969_s9  ;;  %s337_s10 = scalar_lea.vmem %s1302_s3, %s970_s25 }
  0x11   : > { %v1094_v1 = vld [vmem:[%s332_s12] sm:$0xff]   ;;  %v1095_v2 = vld [vmem:[%s332_s12 + $0x8] sm:$0xff]   ;;  %s345_s12 = scalar_lea.vmem %s1307_s8, %s970_s25 }
  0x12   : > { %439 = vrot.lane.b32.xlu0 %v1094_v1, %s1129_s13  ;;  %499 = vrot.lane.b32.xlu1 %v1094_v1, %s1130_s14  ;;  %v975_v16 = vld [vmem:[%s337_s10] sm:$0xff]  }
  0x13   : > { %996 = vmatpush3.bf16.msra.mxu0 %v1094_v1  ;;  %v976_v23 = vunpack.c.l.bf16 %v975_v16  ;;  %v977_v27 = vunpack.c.h.bf16 %v975_v16 }
  0x14   : > { %997 = vmatprep.subr.bf16.mxu0 %v1127_v0 }
  0x16   : > { %441 = vrot.lane.b32.xlu0 %v1095_v2, %s1129_s13  ;;  %501 = vrot.lane.b32.xlu1 %v1095_v2, %s1130_s14 }
  0x17   : > { %998 = vmatpush3.bf16.msra.mxu0 %v1095_v2 }
  0x18   : > { %1003 = vmatprep.subr.bf16.mxu0 %v1127_v0 }
  0x1a   : > { %1000 = vmatmul.mubr.msk.bf16.vlgmr.msra.gmra.mrb[0].mxu0 %vm384_vm1, %v1096_v3  ;;  %357 = vperm.xlu0 %1092, %v353_v4  }
  0x1b   : > { %1007 = vmatprep.mubr.msk.bf16.mxu0 %vm1128_vm0, %v1127_v0  ;;  %362 = vperm.xlu1 %1093, %v354_v5  }
  0x84   : > { %v440_v7 = vpop.permute.xlu0 %439  ;;  %v500_v10 = vpop.permute.xlu1 %499 }
  0x85   : > { %1004 = vmatpush3.bf16.msra.mxu0 %v440_v7 }
  0x86   : > { %1005 = vmatprep.subr.bf16.mxu0 %v1127_v0 }
  0x88   : > { %v442_v8 = vpop.permute.xlu0 %441  ;;  %v502_v11 = vpop.permute.xlu1 %501 }
  0x89   : > { %1006 = vmatpush3.bf16.msra.mxu0 %v442_v8 }
  0x8a   : > { %1011 = vmatprep.subr.bf16.mxu0 %v1127_v0 }
  0x8c   : > { %1008 = vmatmul.mubr.msk.bf16.vlgmr.msra.gmra.mrb[0].mxu0 %vm384_vm1, %v1097_v9 }
  0x8d   : > { %1012 = vmatpush3.bf16.msra.mxu0 %v500_v10  ;;  %1015 = vmatprep.mubr.msk.bf16.mxu0 %vm1128_vm0, %v1127_v0 }
  0x8e   : > { %1013 = vmatprep.subr.bf16.mxu0 %v1127_v0 }
  0x91   : > { %1014 = vmatpush3.bf16.msra.mxu0 %v502_v11 }
  0x98   : > { %1016 = vmatmul.mubr.msk.bf16.vlgmr.msra.gmra.mrb[0].mxu0 %vm384_vm1, %v1098_v12 }
  0x99   : > { %v358_v15 = vpop.permute.xlu0 %357 }
  0x9a   : > { %v363_v18 = vpop.permute.xlu1 %362 }
 0x16b   : > { %v542_v17 = vpop.f32.mrb[0].mxu0 }
 0x16c   : > { %v1043_v20 = vadd.f32 %v542_v17, %v358_v15  ;;  %v1017_v21 = vpop.f32.mrb[1].mxu0 }
 0x16d   : > { %v545_v22 = vpop.f32.mrb[2].mxu0 }
 0x16e   : > { %vm551_vm2 = vcmp.ge.f32.partialorder %v1043_v20, 0.0  ;;  %v553_v24 = vmul.f32 0.2, %v1043_v20  ;;  %v1044_v25 = vadd.f32 %v545_v22, %v363_v18  ;;  %v1018_v26 = vpop.f32.mrb[3].mxu0 }
 0x170   : > { %v555_v28 = vsel %vm551_vm2, %v1043_v20, %v553_v24  ;;  %vm552_vm5 = vcmp.ge.f32.partialorder %v1044_v25, 0.0  ;;  %v554_v29 = vmul.f32 0.2, %v1044_v25 }
 0x171   : > { %v559_v30 = vadd.f32 %v976_v23, %v555_v28 }
 0x172   : > { %v556_v31 = vsel %vm552_vm5, %v1044_v25, %v554_v29 }
 0x173   : > { %v560_v32 = vadd.f32 %v977_v27, %v556_v31  ;;  %v567_v34 = vsel %vm566_vm6, %v559_v30, 0.0 }
 0x175   : > { %v952_v33 = vpack.c.bf16 %v560_v32, %v559_v30  ;;  %v568_v35 = vsel %vm566_vm6, %v560_v32, 0.0 }
 0x176   : > { %v569_v36 = vpack.c.bf16 %v568_v35, %v567_v34 }
 0x177   : > { %1020 = vmatpush3.bf16.msk.msra.mxu1 %vm951_vm7, %v952_v33 }
 0x178   : > { %702 = vrot.lane.b32.xlu0 %v569_v36, %s1130_s14  ;;  %645 = vrot.lane.b32.xlu1 %v569_v36, %s1129_s13 }
 0x179   : > { %1025 = vmatprep.subr.bf16.mxu1 %v1127_v0 }
 0x17a   : > { %1022 = vmatmul.mubr.msk.bf16.vlgmr.msra.gmra.mrb[0].mxu1 %vm589_vm8, %v1099_v37 }
 0x17b   : > { %1027 = vmatprep.mubr.msk.bf16.mxu1 %vm1128_vm0, %v1127_v0 }
 0x17c   : > { %579 = vperm.xlu0 %1092, %v571_v38   ;;  %574 = vperm.xlu1 %1093, %v570_v39  }
 0x180   : > { %765 = vperm.xlu0 %1092, %v757_v40   ;;  %760 = vperm.xlu1 %1093, %v756_v41  }
 0x184   : > { %821 = vrot.lane.b32.xlu0 %v568_v35, %s1129_s13  ;;  %819 = vrot.lane.b32.xlu1 %v567_v34, %s1129_s13 }
 0x1ea   : > { %v646_v42 = vpop.permute.xlu1 %645  ;;  %v703_v44 = vpop.permute.xlu0 %702 }
 0x1eb   : > { %1026 = vmatpush3.bf16.msra.mxu1 %v646_v42 }
 0x1ec   : > { %1031 = vmatprep.subr.bf16.mxu1 %v1127_v0 }
 0x1ee   : > { %1028 = vmatmul.mubr.msk.bf16.vlgmr.msra.gmra.mrb[0].mxu1 %vm589_vm8, %v1100_v43 }
 0x1ef   : > { %1032 = vmatpush3.bf16.msra.mxu1 %v703_v44  ;;  %1033 = vmatprep.mubr.msk.bf16.mxu1 %vm1128_vm0, %v1127_v0 }
 0x1f0   : > { %1037 = vmatprep.subr.bf16.mxu1 %v1127_v0 }
 0x1fa   : > { %1034 = vmatmul.mubr.msk.bf16.vlgmr.msra.gmra.mrb[0].mxu1 %vm589_vm8, %v1101_v45 }
 0x1fb   : > { %1039 = vmatprep.mubr.msk.bf16.mxu1 %vm1128_vm0, %v1127_v0  ;;  %v575_v46 = vpop.permute.xlu1 %574  ;;  %v580_v50 = vpop.permute.xlu0 %579 }
 0x1ff   : > { %v761_v58 = vpop.permute.xlu1 %760  ;;  %v766_v59 = vpop.permute.xlu0 %765 }
 0x203   : > { %v820_v63 = vpop.permute.xlu1 %819  ;;  %v822_v4 = vpop.permute.xlu0 %821 }
 0x2cd   : > { %v742_v47 = vpop.f32.mrb[0].mxu1 }
 0x2ce   : > { %v1045_v48 = vadd.f32 %v742_v47, %v575_v46  ;;  %v1035_v49 = vpop.f32.mrb[1].mxu1 }
 0x2cf   : > { %v745_v51 = vpop.f32.mrb[2].mxu1 }
 0x2d0   : > { %v1046_v52 = vadd.f32 %v745_v51, %v580_v50  ;;  %v1036_v53 = vpop.f32.mrb[3].mxu1  ;;  %v751_v54 = vmax.f32 %v1045_v48, 0.0 }
 0x2d2   : > { %v752_v55 = vmax.f32 %v1046_v52, 0.0 }
 0x2d4   : > { %v753_v56 = vpack.c.bf16 %v752_v55, %v751_v54 }
 0x2d6   : > { %1038 = vmatpush3.bf16.msra.mxu1 %v753_v56 }
 0x2d9   : > { %1040 = vmatmul.mubr.msk.bf16.vlgmr.msra.gmra.mrb[4].mxu1 %vm589_vm8, %v1102_v57 }
 0x3ac   : > { %v810_v60 = vpop.f32.mrb[4].mxu1 }
 0x3ad   : > { %v811_v61 = vadd.f32 %v810_v60, %v761_v58  ;;  %v1041_v62 = vpop.f32.mrb[5].mxu1 }
 0x3ae   : > { %v813_v0 = vpop.f32.mrb[6].mxu1 }
 0x3af   : > { %v825_v1 = vadd.f32 %v820_v63, %v811_v61  ;;  %v814_v2 = vadd.f32 %v813_v0, %v766_v59  ;;  %v1042_v3 = vpop.f32.mrb[7].mxu1 }
 0x3b1   : > { %v972_v5 = vpack.c.bf16 %v825_v1, %v825_v1  ;;  %v826_v6 = vadd.f32 %v822_v4, %v814_v2 }
 0x3b3   : > { %836 = vst.msk [vmem:[%s345_s12] sm:$0xf] %vm835_vm9, %v972_v5  ;;  %v973_v7 = vpack.c.bf16 %v826_v6, %v826_v6 }
 0x3b5   : > { %837 = vst.msk [vmem:[%s345_s12 + $0x4] sm:$0xf] %vm835_vm9, %v973_v7 }
 0x3b6 PF: > { %s18_s29 = sadd.s32 1, %s1125_s29   ;;  %s1308_s27 = smov %s1121_s28 }
 0x3b7   : > { %p15_p5 = scmp.ge.s32.totalorder %s18_s29, 4   ;;  %s1309_s28 = smov %s1311_s30 }
 0x3b9   :  { %17 = sbr.rel (!%p15_p5) target bundleno = 2 (0x2), region = 89 }

// kernel: unet_forward.9
= control target key start
LH: loop header
LB: loop body
LE: loop exit
PB: predicated region body
PF: predicated region fallthrough
CT: control target
= control target key end

     0   :  { %s890_s21 = smov 0   ;;  %s892_s22 = smov 0   ;;  %s986_s0 = inlined_call_operand.vmem [shape: bf16[2,16,20], index: 0, kind: input, shape index: {}]   ;;  %s987_s1 = inlined_call_operand.vmem [shape: bf16[3,8,16], index: 1, kind: input, shape index: {}]   ;;  %s988_s2 = inlined_call_operand.vmem [shape: f32[8,1], index: 2, kind: input, shape index: {}]   ;;  %s989_s3 = inlined_call_operand.vmem [shape: bf16[2,8,18], index: 3, kind: input, shape index: {}]   ;;  %s990_s4 = inlined_call_operand.vmem [shape: bf16[3,4,8], index: 4, kind: input, shape index: {}]   ;;  %s991_s5 = inlined_call_operand.vmem [shape: f32[4,1], index: 5, kind: input, shape index: {}]   ;;  %s992_s6 = inlined_call_operand.vmem [shape: bf16[2,4,16], index: 6, kind: output, shape index: {}]  }
   0x1   :  { %s894_s23 = smov 0  }
   0x2 LB: > { %s28_s24 = sadd.s32 1, %s844_s22  ;;  %p709_p0 = scmp.ge.s32.totalorder %s848_s23, 1  ;;  %s848_s23 = sphi %s894_s23, %s16_s23   ;;  %s844_s22 = sphi %s892_s22, %s994_s22   ;;  %s840_s21 = sphi %s890_s21, %s993_s21  }
   0x3   : > { %p30_p1 = scmp.ge.s32.totalorder %s28_s24, 2  ;;  %p235_p2 = scmp.lt.s32.totalorder %s848_s23, 3 }
   0x5   : > { %s996_s24 = smov (%p30_p1, %s28_s24), 0  ;;  %p236_p3 = pnand %p709_p0, %p235_p2 }
   0x6   : > { %p271_p4 = scmp.lt.s32.totalorder (!%p236_p3), %s840_s21, 1  ;;  %v850_v0 = vmov (!%p236_p3), 0.0   ;;  %vm851_vm0 = vmmov (!%p236_p3), 0   ;;  %s852_s29 = smov (!%p236_p3), 127   ;;  %v297_v2 = vld [vmem:[%s987_s1] sm:$0xf] (!%p236_p3)  ;;  %v452_v9 = vlaneseq (!%p236_p3) }
   0x7   : > { %239 = sbr.rel (%p236_p3) target bundleno = 718 (0x2ce), region = 44  ;;  %740 = vmatprep.subr.bf16.mxu0 (!%p236_p3), %v850_v0  ;;  %742 = vmatprep.mubr.msk.bf16.mxu0 (!%p236_p3), %vm851_vm0, %v850_v0  ;;  %vm304_vm1 = vcmask (!%p236_p3), 130048   ;;  %v291_v3 = vld [vmem:[%s988_s2] sm:$0xff] (!%p236_p3)  ;;  %v853_v4 = vmov (!%p236_p3), 0   ;;  %s854_s10 = smov (!%p236_p3), 126   ;;  %vm471_vm6 = vcmask (!%p236_p3), 1043456  }
   0x8   : > { %758 = vmatprep.subr.bf16.mxu1 (!%p236_p3), %v850_v0  ;;  %760 = vmatprep.mubr.msk.bf16.mxu1 (!%p236_p3), %vm851_vm0, %v850_v0  ;;  %v716_v6 = vld [vmem:[%s987_s1 + $0x4] sm:$0xf] (!%p236_p3)  ;;  %v718_v8 = vld [vmem:[%s987_s1 + $0x8] sm:$0xf] (!%p236_p3)  ;;  %v453_v10 = vand.u32 (!%p236_p3), 127, %v452_v9  ;;  %vm467_vm7 = vcmask (!%p236_p3), 64512  }
   0x9   : > { %823 = vset.pattern.permute.xlu1 (!%p236_p3), %v853_v4  ;;  %824 = vset.pattern.permute.xlu0 (!%p236_p3), %v853_v4  ;;  %v460_v26 = vld [vmem:[%s991_s5] sm:$0xf] (!%p236_p3)  ;;  %v723_v33 = vld [vmem:[%s990_s4 + $0x4] sm:$0x3] (!%p236_p3)  ;;  %vm620_vm8 = vcmask (!%p236_p3), 123904  }
   0xa   : > { %294 = vperm.xlu1 (!%p236_p3), %823, %v291_v3   ;;  %v454_v12 = vadd.s32 (!%p236_p3), 4294967295, %v453_v10  ;;  %v466_v27 = vld [vmem:[%s990_s4] sm:$0x3] (!%p236_p3)  ;;  %v721_v31 = vld [vmem:[%s990_s4 + $0x2] sm:$0x3] (!%p236_p3) }
   0xc   : > { %vm455_vm2 = vcmp.ge.s32.totalorder (!%p236_p3), %v454_v12, 0  ;;  %vm456_vm3 = vcmp.lt.s32.totalorder (!%p236_p3), %v454_v12, 16 }
   0xd   : > { %vm457_vm5 = vmand (!%p236_p3), %vm455_vm2, %vm456_vm3 }
   0xe   : > { %s998_s21 = smov (!%p271_p4, %s840_s21), 1 }
   0xf   : > { %s727_s25 = sshll.u32 %s998_s21, 3  ;;  %s712_s15 = sshll.u32 %s998_s21, 2 }
  0x10   : > { %s275_s28 = scalar_lea.vmem %s986_s0, %s727_s25  ;;  %s279_s18 = scalar_lea.vmem %s989_s3, %s712_s15 }
  0x11   : > { %v825_v1 = vld [vmem:[%s275_s28] sm:$0xff]   ;;  %s713_s7 = sshll.u32 %s998_s21, 1 }
  0x12   : > { %351 = vrot.lane.b32.xlu0 %v825_v1, %s852_s29  ;;  %741 = vmatpush3.bf16.msra.mxu0 %v825_v1  ;;  %v290_v13 = vld [vmem:[%s279_s18] sm:$0xf] }
  0x13   : > { %746 = vmatprep.subr.bf16.mxu0 %v850_v0  ;;  %v450_v17 = vunpack.c.l.bf16 %v290_v13 }
  0x15   : > { %743 = vmatmul.mubr.msk.bf16.vlgmr.msra.gmra.mrb[0].mxu0 %vm304_vm1, %v297_v2 }
  0x16   : > { %400 = vrot.lane.b32.xlu0 %v825_v1, %s854_s10  ;;  %748 = vmatprep.mubr.msk.bf16.mxu0 %vm851_vm0, %v850_v0 }
  0x84   : > { %v352_v5 = vpop.permute.xlu0 %351 }
  0x85   : > { %747 = vmatpush3.bf16.msra.mxu0 %v352_v5 }
  0x86   : > { %752 = vmatprep.subr.bf16.mxu0 %v850_v0 }
  0x88   : > { %749 = vmatmul.mubr.msk.bf16.vlgmr.msra.gmra.mrb[0].mxu0 %vm304_vm1, %v716_v6  ;;  %v401_v7 = vpop.permute.xlu0 %400 }
  0x89   : > { %753 = vmatpush3.bf16.msra.mxu0 %v401_v7  ;;  %754 = vmatprep.mubr.msk.bf16.mxu0 %vm851_vm0, %v850_v0  ;;  %v295_v11 = vpop.permute.xlu1 %294 }
  0x94   : > { %755 = vmatmul.mubr.msk.bf16.vlgmr.msra.gmra.mrb[0].mxu0 %vm304_vm1, %v718_v8 }
 0x167   : > { %v440_v14 = vpop.f32.mrb[0].mxu0 }
 0x168   : > { %v776_v15 = vadd.f32 %v440_v14, %v295_v11  ;;  %v756_v16 = vpop.f32.mrb[1].mxu0 }
 0x169   : > { %v443_v18 = vpop.f32.mrb[2].mxu0 }
 0x16a   : > { %vm447_vm4 = vcmp.ge.f32.partialorder %v776_v15, 0.0  ;;  %v448_v19 = vmul.f32 0.2, %v776_v15  ;;  %v757_v20 = vpop.f32.mrb[3].mxu0 }
 0x16c   : > { %v449_v21 = vsel %vm447_vm4, %v776_v15, %v448_v19 }
 0x16d   : > { %v451_v22 = vadd.f32 %v450_v17, %v449_v21 }
 0x16f   : > { %v458_v23 = vsel %vm457_vm5, %v451_v22, 0.0 }
 0x170   : > { %v459_v24 = vpack.c.bf16 %v458_v23, %v458_v23 }
 0x172   : > { %570 = vrot.lane.b32.xlu0 %v459_v24, %s854_s10  ;;  %519 = vrot.lane.b32.xlu1 %v459_v24, %s852_s29  ;;  %v473_v25 = vsel %vm471_vm6, %v459_v24, 0  ;;  %s286_s10 = scalar_lea.vmem %s992_s6, %s713_s7 }
 0x173   : > { %759 = vmatpush3.bf16.msra.mxu1 %v473_v25 }
 0x174   : > { %764 = vmatprep.subr.bf16.mxu1 %v850_v0 }
 0x176   : > { %463 = vperm.xlu1 %823, %v460_v26   ;;  %761 = vmatmul.mubr.msk.bf16.vlgmr.msra.gmra.mrb[0].mxu1 %vm467_vm7, %v466_v27 }
 0x177   : > { %766 = vmatprep.mubr.msk.bf16.mxu1 %vm851_vm0, %v850_v0 }
 0x1e4   : > { %v520_v28 = vpop.permute.xlu1 %519  ;;  %v571_v30 = vpop.permute.xlu0 %570 }
 0x1e5   : > { %v525_v29 = vsel %vm471_vm6, %v520_v28, 0  ;;  %v576_v32 = vsel %vm471_vm6, %v571_v30, 0 }
 0x1e6   : > { %765 = vmatpush3.bf16.msra.mxu1 %v525_v29 }
 0x1e7   : > { %770 = vmatprep.subr.bf16.mxu1 %v850_v0 }
 0x1e9   : > { %767 = vmatmul.mubr.msk.bf16.vlgmr.msra.gmra.mrb[0].mxu1 %vm467_vm7, %v721_v31 }
 0x1ea   : > { %771 = vmatpush3.bf16.msra.mxu1 %v576_v32  ;;  %772 = vmatprep.mubr.msk.bf16.mxu1 %vm851_vm0, %v850_v0 }
 0x1f5   : > { %773 = vmatmul.mubr.msk.bf16.vlgmr.msra.gmra.mrb[0].mxu1 %vm467_vm7, %v723_v33  ;;  %v464_v34 = vpop.permute.xlu1 %463 }
 0x2c8   : > { %v612_v35 = vpop.f32.mrb[0].mxu1 }
 0x2c9   : > { %v777_v36 = vadd.f32 %v612_v35, %v464_v34  ;;  %v774_v37 = vpop.f32.mrb[1].mxu1 }
 0x2ca   : > { %v615_v38 = vpop.f32.mrb[2].mxu1 }
 0x2cb   : > { %v619_v39 = vpack.c.bf16 %v777_v36, %v777_v36  ;;  %v775_v40 = vpop.f32.mrb[3].mxu1 }
 0x2cd   : > { %621 = vst.msk [vmem:[%s286_s10] sm:$0x3] %vm620_vm8, %v619_v39 }
 0x2ce PF: > { %s16_s23 = sadd.s32 1, %s848_s23   ;;  %s993_s21 = smov %s844_s22 }
 0x2cf   : > { %p13_p5 = scmp.ge.s32.totalorder %s16_s23, 4   ;;  %s994_s22 = smov %s996_s24 }
 0x2d1   :  { %15 = sbr.rel (!%p13_p5) target bundleno = 2 (0x2), region = 81 }

</bundles_post_ra>
